<compile_context>
chip_gen: v7x
topology: tpu7x:2x2x1
jax: 0.10.0
libtpu: 0.0.40
codegen_flags: <defaults>
</compile_context>

<pallas_src>
import jax
import jax.numpy as jnp
from jax import lax
from jax.experimental import pallas as pl
from jax.experimental.pallas import tpu as pltpu


# ----------------------------------------------------------------------------
# Pallas kernel: fused encoder forward for one batch block of B images
# ----------------------------------------------------------------------------
def _make_encoder_kernel(B, Ho, Wo, Cin, Cout, Cpad):
    HW = Ho * Wo
    M = B * HW

    def kernel(xim_ref, w1c_ref, w23_ref, w4_ref, wd2_ref, b_ref,
               o_ref, pad_ref):
        # xim_ref : (B, HW, 9*Cin) bf16   pre-im2col'ed input (stride-2 taps)
        # w1c_ref : (9*Cin, 2*Cout) bf16  [conv1 | expanded 1x1-shortcut]
        # w23_ref : (2, 9*Cout, Cout) bf16  conv2 / conv3 im2col weights
        # w4_ref  : (9*Cout, Cpad) bf16   conv4, output-padded to 128 lanes
        # wd2_ref : (Cout, Cpad) bf16     res_block2 1x1 shortcut, padded
        # b_ref   : (5, >=Cpad) f32       folded biases
        # o_ref   : (B, HW, Cpad) f32     lane-dense output
        # pad_ref : (B, Ho+2, Wo+2, Cout) f32 halo-padded activation scratch
        f32 = jnp.float32
        bf16 = jnp.bfloat16
        relu = lambda v: jnp.maximum(v, 0.0)

        # (Re)zero only the 1-pixel halo border ring; the interior is always
        # overwritten by store_padded() before any read.
        pad_ref[:, 0:1, :, :] = jnp.zeros((B, 1, Wo + 2, Cout), f32)
        pad_ref[:, Ho + 1:Ho + 2, :, :] = jnp.zeros((B, 1, Wo + 2, Cout), f32)
        pad_ref[:, :, 0:1, :] = jnp.zeros((B, Ho + 2, 1, Cout), f32)
        pad_ref[:, :, Wo + 1:Wo + 2, :] = jnp.zeros((B, Ho + 2, 1, Cout), f32)

        def store_padded(act_2d):
            pad_ref[:, 1:1 + Ho, 1:1 + Wo, :] = act_2d.reshape(B, Ho, Wo, Cout)

        def conv3x3(tap_w):
            # 3x3 stride-1 conv as 9 shifted MXU matmuls accumulated in f32;
            # every operand access is a unit-stride static slice of pad_ref.
            acc = None
            for kh in range(3):
                for kw in range(3):
                    lhs = pad_ref[:, kh:kh + Ho, kw:kw + Wo, :]
                    lhs = lhs.reshape(M, Cout).astype(bf16)
                    p = jnp.dot(lhs, tap_w(kh * 3 + kw),
                                preferred_element_type=f32)
                    acc = p if acc is None else acc + p
            return acc

        # ------------------- res_block 1 (stride 2) -------------------------
        # conv1 (3x3 s2) and its 1x1 s2 shortcut share ONE matmul.
        xim = xim_ref[...].reshape(M, 9 * Cin)
        t1 = jnp.dot(xim, w1c_ref[...], preferred_element_type=f32)
        t1 = t1 + b_ref[0:1, :2 * Cout]
        a1 = relu(t1[:, :Cout])            # conv_block_1 output (ReLU'd)
        resid1 = t1[:, Cout:2 * Cout]      # 1x1 downsample shortcut

        store_padded(a1)
        bmain1 = conv3x3(lambda t: w23_ref[0, t * Cout:(t + 1) * Cout, :])
        y1 = relu(bmain1 + b_ref[1:2, :Cout] + resid1)

        # ------------------- res_block 2 (stride 1) -------------------------
        # 1x1 shortcut computed immediately so y1 is not kept live across the
        # two following convs (at larger shapes park resid2 in VMEM instead).
        resid2 = jnp.dot(y1.astype(bf16), wd2_ref[...],
                         preferred_element_type=f32) + b_ref[4:5, :Cpad]
        store_padded(y1)
        a2 = relu(conv3x3(lambda t: w23_ref[1, t * Cout:(t + 1) * Cout, :])
                  + b_ref[2:3, :Cout])
        store_padded(a2)
        bmain2 = conv3x3(lambda t: w4_ref[t * Cout:(t + 1) * Cout, :])
        y2 = relu(bmain2 + b_ref[3:4, :Cpad] + resid2)   # cols >= Cout stay 0

        # Lane-dense full-width (Cpad = multiple of 128) unmasked store.
        o_ref[...] = y2.reshape(B, HW, Cpad)

    return kernel


# ----------------------------------------------------------------------------
# Wrapper: BN folding, weight packing, conv1 im2col, pallas_call
# ----------------------------------------------------------------------------
def _fold_conv_bn(p, eps=1e-5):
    scale = p["gamma"] / jnp.sqrt(p["var"] + eps)
    w_f = p["w"] * scale[:, None, None, None]                # OIHW, per-Cout
    b_f = (p["b"] - p["mean"]) * scale + p["beta"]
    return w_f, b_f


def _w3x3_mat(p):
    wf, bf = _fold_conv_bn(p)
    cout = wf.shape[0]
    w = jnp.transpose(wf, (2, 3, 1, 0)).reshape(-1, cout)    # ((kh,kw,cin),co)
    return w.astype(jnp.float32), bf.astype(jnp.float32)


def _w1x1_mat(p):
    wf, bf = _fold_conv_bn(p)
    w = jnp.transpose(wf[:, :, 0, 0], (1, 0))                # (cin, cout)
    return w.astype(jnp.float32), bf.astype(jnp.float32)


def _pick_block_batch(N, HW):
    # Target M = B*HW of ~256+ rows per matmul (>=128 already fills a v5e MXU
    # pass).  For v7x 2-TC megacore, prefer B such that N/B stays even when
    # N allows it.
    best = 1
    for b in range(1, N + 1):
        if N % b == 0 and b * HW <= 4096:
            best = b
            if b * HW >= 256:
                break
    return best


def encoder_forward(x_nchw, params):
    """Inference forward of encoder(in_map, out_map). NCHW in / NCHW out."""
    N, Cin, H, W = x_nchw.shape
    assert H % 2 == 0 and W % 2 == 0
    Ho, Wo = H // 2, W // 2
    HW = Ho * Wo
    Cout = params["r1_conv1"]["w"].shape[0]
    Cpad = max(128, -(-Cout // 128) * 128)        # lane-dense final width
    BW = max(Cpad, -(-(2 * Cout) // 128) * 128)   # bias table width
    bf16 = jnp.bfloat16

    # ---- BN-fold + im2col weight layouts (bf16 MXU operands) ---------------
    w1, b1 = _w3x3_mat(params["r1_conv1"])            # (9*Cin, Cout)
    wd1, bd1 = _w1x1_mat(params["r1_down"])           # (Cin, Cout)
    w2, b2 = _w3x3_mat(params["r1_conv2"])
    w3, b3 = _w3x3_mat(params["r2_conv1"])
    w4, b4 = _w3x3_mat(params["r2_conv2"])
    wd2, bd2 = _w1x1_mat(params["r2_down"])

    # 1x1 stride-2 shortcut input == centre tap (t=4) of conv1's im2col, so it
    # can be fused into conv1's matmul by expanding wd1 to 9*Cin rows.
    w1d = jnp.zeros((9 * Cin, Cout), jnp.float32).at[4 * Cin:5 * Cin].set(wd1)
    w1c = jnp.concatenate([w1, w1d], axis=1).astype(bf16)      # (9Cin, 2Cout)
    w23 = jnp.stack([w2, w3]).astype(bf16)                     # (2, 9Cout, Cout)
    w4p = jnp.zeros((9 * Cout, Cpad), jnp.float32).at[:, :Cout].set(w4).astype(bf16)
    wd2p = jnp.zeros((Cout, Cpad), jnp.float32).at[:, :Cout].set(wd2).astype(bf16)

    ball = jnp.zeros((5, BW), jnp.float32)
    ball = ball.at[0, :Cout].set(b1).at[0, Cout:2 * Cout].set(bd1)
    ball = ball.at[1, :Cout].set(b2)
    ball = ball.at[2, :Cout].set(b3)
    ball = ball.at[3, :Cout].set(b4)
    ball = ball.at[4, :Cout].set(bd2)

    # ---- conv1 im2col (stride 2, pad 1) done once in XLA, cast to bf16 ------
    x = jnp.transpose(x_nchw, (0, 2, 3, 1)).astype(jnp.float32)       # NHWC
    xp = jnp.pad(x, ((0, 0), (1, 1), (1, 1), (0, 0)))
    taps = [xp[:, kh:kh + 2 * Ho:2, kw:kw + 2 * Wo:2, :]
            for kh in range(3) for kw in range(3)]
    xim = jnp.concatenate(taps, axis=-1).reshape(N, HW, 9 * Cin).astype(bf16)

    # ---- batch blocking ------------------------------------------------------
    B = _pick_block_batch(N, HW)
    NB = N // B

    def rep(arr):  # small array resident in VMEM, constant block index
        nd = arr.ndim
        return pl.BlockSpec(arr.shape, lambda n: (0,) * nd)

    out = pl.pallas_call(
        _make_encoder_kernel(B, Ho, Wo, Cin, Cout, Cpad),
        out_shape=jax.ShapeDtypeStruct((N, HW, Cpad), jnp.float32),
        grid_spec=pltpu.PrefetchScalarGridSpec(
            num_scalar_prefetch=0,
            grid=(NB,),
            in_specs=[
                pl.BlockSpec((B, HW, 9 * Cin), lambda n: (n, 0, 0)),
                rep(w1c), rep(w23), rep(w4p), rep(wd2p), rep(ball),
            ],
            out_specs=pl.BlockSpec((B, HW, Cpad), lambda n: (n, 0, 0)),
            scratch_shapes=[
                pltpu.VMEM((B, Ho + 2, Wo + 2, Cout), jnp.float32),
            ],
        ),
        compiler_params=pltpu.CompilerParams(
            dimension_semantics=("parallel",),
            # Re-derive for large shapes (v7x has 64 MiB physical VMEM).
            vmem_limit_bytes=32 * 1024 * 1024,
        ),
    )(xim, w1c, w23, w4p, wd2p, ball)

    out = out[..., :Cout].reshape(N, Ho, Wo, Cout)
    return jnp.transpose(out, (0, 3, 1, 2))


# ----------------------------------------------------------------------------
# Pure-JAX reference (exact PyTorch eval-mode semantics) + test harness
# ----------------------------------------------------------------------------
def _conv_bn_ref(x, p, stride, ksize, relu, eps=1e-5):
    pad = ksize // 2
    y = lax.conv_general_dilated(
        x, p["w"], (stride, stride), ((pad, pad), (pad, pad)),
        dimension_numbers=("NCHW", "OIHW", "NCHW"),
        precision=lax.Precision.HIGHEST)
    y = y + p["b"][None, :, None, None]
    y = (p["gamma"][None, :, None, None]
         * (y - p["mean"][None, :, None, None])
         / jnp.sqrt(p["var"] + eps)[None, :, None, None]
         + p["beta"][None, :, None, None])
    if relu:
        y = jnp.maximum(y, 0.0)
    return y


def _res_block_ref(x, pc1, pc2, pd, stride):
    a = _conv_bn_ref(x, pc1, stride, 3, True)
    b = _conv_bn_ref(a, pc2, 1, 3, False)
    r = _conv_bn_ref(x, pd, stride, 1, False)
    return jnp.maximum(b + r, 0.0)


def encoder_ref(x, params):
    y1 = _res_block_ref(x, params["r1_conv1"], params["r1_conv2"],
                        params["r1_down"], 2)
    return _res_block_ref(y1, params["r2_conv1"], params["r2_conv2"],
                          params["r2_down"], 1)


def _make_conv_bn(key, cin, cout, k):
    k1, k2, k3, k4, k5, k6 = jax.random.split(key, 6)
    return dict(
        w=0.1 * jax.random.normal(k1, (cout, cin, k, k), jnp.float32),
        b=0.1 * jax.random.normal(k2, (cout,), jnp.float32),
        gamma=jax.random.uniform(k3, (cout,), jnp.float32, 0.5, 1.5),
        beta=0.1 * jax.random.normal(k4, (cout,), jnp.float32),
        mean=0.1 * jax.random.normal(k5, (cout,), jnp.float32),
        var=jax.random.uniform(k6, (cout,), jnp.float32, 0.5, 1.5),
    )


if __name__ == "__main__":
    key = jax.random.PRNGKey(0)
    N, in_map, out_map, H, W = 2, 4, 8, 16, 16
    keys = jax.random.split(key, 7)
    x = jax.random.normal(keys[0], (N, in_map, H, W), jnp.float32)
    # TODO(synk): BatchNorm is folded with running stats (eval mode); train-mode
    # batch-statistic updates are not implemented.
    params = {
        "r1_conv1": _make_conv_bn(keys[1], in_map, out_map, 3),
        "r1_conv2": _make_conv_bn(keys[2], out_map, out_map, 3),
        "r1_down":  _make_conv_bn(keys[3], in_map, out_map, 1),
        "r2_conv1": _make_conv_bn(keys[4], out_map, out_map, 3),
        "r2_conv2": _make_conv_bn(keys[5], out_map, out_map, 3),
        "r2_down":  _make_conv_bn(keys[6], out_map, out_map, 1),
    }

    out = jax.block_until_ready(encoder_forward(x, params))
    ref = jax.block_until_ready(encoder_ref(x, params))

    assert out.shape == (N, out_map, H // 2, W // 2), out.shape
    # bf16 MXU operands (f32 accumulate) -> tolerance relaxed vs f32-only run.
    err = float(jnp.max(jnp.abs(out - ref)))
    assert jnp.allclose(out, ref, atol=5e-2, rtol=5e-2), err
    print("KERNEL_OK")
</pallas_src>

<mosaic_0001>
module attributes {stable_mosaic.version = 11 : i64} {
  func.func @kernel(%arg0: i32, %arg1: memref<2x64x36xbf16, #tpu.memory_space<vmem>>, %arg2: memref<36x16xbf16, #tpu.memory_space<vmem>>, %arg3: memref<2x72x8xbf16, #tpu.memory_space<vmem>>, %arg4: memref<72x128xbf16, #tpu.memory_space<vmem>>, %arg5: memref<8x128xbf16, #tpu.memory_space<vmem>>, %arg6: memref<5x128xf32, #tpu.memory_space<vmem>>, %arg7: memref<2x64x128xf32, #tpu.memory_space<vmem>>, %arg8: memref<2x10x10x8xf32, #tpu.memory_space<vmem>>) attributes {dimension_semantics = [#tpu.dimension_semantics<parallel>], iteration_bounds = array<i64: 1>, scalar_prefetch = 0 : i64, scratch_operands = 1 : i64, tpu.core_type = #tpu.core_type<tc>, window_params = [{transform_indices = @transform_0, window_bounds = array<i64: 2, 64, 36>}, {pipeline_mode = #tpu.pipeline_mode<synchronous>, transform_indices = @transform_1, window_bounds = array<i64: 36, 16>}, {pipeline_mode = #tpu.pipeline_mode<synchronous>, transform_indices = @transform_2, window_bounds = array<i64: 2, 72, 8>}, {pipeline_mode = #tpu.pipeline_mode<synchronous>, transform_indices = @transform_3, window_bounds = array<i64: 72, 128>}, {pipeline_mode = #tpu.pipeline_mode<synchronous>, transform_indices = @transform_4, window_bounds = array<i64: 8, 128>}, {pipeline_mode = #tpu.pipeline_mode<synchronous>, transform_indices = @transform_5, window_bounds = array<i64: 5, 128>}, {transform_indices = @transform_6, window_bounds = array<i64: 2, 64, 128>}]} {
    %cst = arith.constant 0.000000e+00 : f32
    %0 = vector.broadcast %cst : f32 to vector<2x1x10x8xf32>
    %c0 = arith.constant 0 : index
    %c0_0 = arith.constant 0 : index
    %c0_1 = arith.constant 0 : index
    %c0_2 = arith.constant 0 : index
    %1 = vector.load %arg8[%c0, %c0_0, %c0_1, %c0_2] : memref<2x10x10x8xf32, #tpu.memory_space<vmem>>, vector<2x1x10x8xf32>
    tpu.vector_store %arg8[%c0, %c0_0, %c0_1, %c0_2], %0 {strides = array<i32>} : memref<2x10x10x8xf32, #tpu.memory_space<vmem>>, vector<2x1x10x8xf32>,
    %cst_3 = arith.constant 0.000000e+00 : f32
    %2 = vector.broadcast %cst_3 : f32 to vector<2x1x10x8xf32>
    %c0_4 = arith.constant 0 : index
    %c9 = arith.constant 9 : index
    %c0_5 = arith.constant 0 : index
    %c0_6 = arith.constant 0 : index
    %3 = vector.load %arg8[%c0_4, %c9, %c0_5, %c0_6] : memref<2x10x10x8xf32, #tpu.memory_space<vmem>>, vector<2x1x10x8xf32>
    tpu.vector_store %arg8[%c0_4, %c9, %c0_5, %c0_6], %2 {strides = array<i32>} : memref<2x10x10x8xf32, #tpu.memory_space<vmem>>, vector<2x1x10x8xf32>,
    %cst_7 = arith.constant 0.000000e+00 : f32
    %4 = vector.broadcast %cst_7 : f32 to vector<2x10x1x8xf32>
    %c0_8 = arith.constant 0 : index
    %c0_9 = arith.constant 0 : index
    %c0_10 = arith.constant 0 : index
    %c0_11 = arith.constant 0 : index
    %5 = vector.load %arg8[%c0_8, %c0_9, %c0_10, %c0_11] : memref<2x10x10x8xf32, #tpu.memory_space<vmem>>, vector<2x10x1x8xf32>
    tpu.vector_store %arg8[%c0_8, %c0_9, %c0_10, %c0_11], %4 {strides = array<i32>} : memref<2x10x10x8xf32, #tpu.memory_space<vmem>>, vector<2x10x1x8xf32>,
    %cst_12 = arith.constant 0.000000e+00 : f32
    %6 = vector.broadcast %cst_12 : f32 to vector<2x10x1x8xf32>
    %c0_13 = arith.constant 0 : index
    %c0_14 = arith.constant 0 : index
    %c9_15 = arith.constant 9 : index
    %c0_16 = arith.constant 0 : index
    %7 = vector.load %arg8[%c0_13, %c0_14, %c9_15, %c0_16] : memref<2x10x10x8xf32, #tpu.memory_space<vmem>>, vector<2x10x1x8xf32>
    tpu.vector_store %arg8[%c0_13, %c0_14, %c9_15, %c0_16], %6 {strides = array<i32>} : memref<2x10x10x8xf32, #tpu.memory_space<vmem>>, vector<2x10x1x8xf32>,
    %c0_17 = arith.constant 0 : index
    %c0_18 = arith.constant 0 : index
    %c0_19 = arith.constant 0 : index
    %8 = vector.load %arg1[%c0_17, %c0_18, %c0_19] : memref<2x64x36xbf16, #tpu.memory_space<vmem>>, vector<2x64x36xbf16>
    %9 = vector.shape_cast %8 : vector<2x64x36xbf16> to vector<128x36xbf16>
    %c0_20 = arith.constant 0 : index
    %c0_21 = arith.constant 0 : index
    %10 = vector.load %arg2[%c0_20, %c0_21] : memref<36x16xbf16, #tpu.memory_space<vmem>>, vector<36x16xbf16>
    %cst_22 = arith.constant dense<0.000000e+00> : vector<128x16xf32>
    %11 = tpu.matmul %9, %10, %cst_22 {dimension_numbers = #tpu.dot_dimension_numbers<[1], [0], [0], [1], [0, 0, 1, 1], [], []>} : vector<128x36xbf16>, vector<36x16xbf16>, vector<128x16xf32> -> vector<128x16xf32>
    %c0_23 = arith.constant 0 : index
    %c0_24 = arith.constant 0 : index
    %12 = vector.load %arg6[%c0_23, %c0_24] : memref<5x128xf32, #tpu.memory_space<vmem>>, vector<1x16xf32>
    %13 = vector.broadcast %12 : vector<1x16xf32> to vector<128x16xf32>
    %14 = arith.addf %11, %13 : vector<128x16xf32>
    %15 = vector.extract_strided_slice %14 {offsets = [0, 0], sizes = [128, 8], strides = [1, 1]} : vector<128x16xf32> to vector<128x8xf32>
    %cst_25 = arith.constant 0.000000e+00 : f32
    %16 = vector.broadcast %cst_25 : f32 to vector<128x8xf32>
    %17 = arith.maximumf %15, %16 : vector<128x8xf32>
    %18 = vector.extract_strided_slice %14 {offsets = [0, 8], sizes = [128, 8], strides = [1, 1]} : vector<128x16xf32> to vector<128x8xf32>
    %19 = vector.shape_cast %17 : vector<128x8xf32> to vector<2x8x8x8xf32>
    %c0_26 = arith.constant 0 : index
    %c1 = arith.constant 1 : index
    %c1_27 = arith.constant 1 : index
    %c0_28 = arith.constant 0 : index
    %20 = vector.load %arg8[%c0_26, %c1, %c1_27, %c0_28] : memref<2x10x10x8xf32, #tpu.memory_space<vmem>>, vector<2x8x8x8xf32>
    tpu.vector_store %arg8[%c0_26, %c1, %c1_27, %c0_28], %19 {strides = array<i32>} : memref<2x10x10x8xf32, #tpu.memory_space<vmem>>, vector<2x8x8x8xf32>,
    %c0_29 = arith.constant 0 : index
    %c0_30 = arith.constant 0 : index
    %c0_31 = arith.constant 0 : index
    %c0_32 = arith.constant 0 : index
    %21 = vector.load %arg8[%c0_29, %c0_30, %c0_31, %c0_32] : memref<2x10x10x8xf32, #tpu.memory_space<vmem>>, vector<2x8x8x8xf32>
    %22 = vector.shape_cast %21 : vector<2x8x8x8xf32> to vector<128x8xf32>
    %23 = arith.truncf %22 : vector<128x8xf32> to vector<128x8xbf16>
    %c0_33 = arith.constant 0 : index
    %c0_34 = arith.constant 0 : index
    %c0_35 = arith.constant 0 : index
    %24 = vector.load %arg3[%c0_33, %c0_34, %c0_35] : memref<2x72x8xbf16, #tpu.memory_space<vmem>>, vector<1x8x8xbf16>
    %25 = vector.shape_cast %24 : vector<1x8x8xbf16> to vector<8x8xbf16>
    %cst_36 = arith.constant dense<0.000000e+00> : vector<128x8xf32>
    %26 = tpu.matmul %23, %25, %cst_36 {dimension_numbers = #tpu.dot_dimension_numbers<[1], [0], [0], [1], [0, 0, 1, 1], [], []>} : vector<128x8xbf16>, vector<8x8xbf16>, vector<128x8xf32> -> vector<128x8xf32>
    %c0_37 = arith.constant 0 : index
    %c0_38 = arith.constant 0 : index
    %c1_39 = arith.constant 1 : index
    %c0_40 = arith.constant 0 : index
    %27 = vector.load %arg8[%c0_37, %c0_38, %c1_39, %c0_40] : memref<2x10x10x8xf32, #tpu.memory_space<vmem>>, vector<2x8x8x8xf32>
    %28 = vector.shape_cast %27 : vector<2x8x8x8xf32> to vector<128x8xf32>
    %29 = arith.truncf %28 : vector<128x8xf32> to vector<128x8xbf16>
    %c0_41 = arith.constant 0 : index
    %c8 = arith.constant 8 : index
    %c0_42 = arith.constant 0 : index
    %30 = vector.load %arg3[%c0_41, %c8, %c0_42] : memref<2x72x8xbf16, #tpu.memory_space<vmem>>, vector<1x8x8xbf16>
    %31 = vector.shape_cast %30 : vector<1x8x8xbf16> to vector<8x8xbf16>
    %cst_43 = arith.constant dense<0.000000e+00> : vector<128x8xf32>
    %32 = tpu.matmul %29, %31, %cst_43 {dimension_numbers = #tpu.dot_dimension_numbers<[1], [0], [0], [1], [0, 0, 1, 1], [], []>} : vector<128x8xbf16>, vector<8x8xbf16>, vector<128x8xf32> -> vector<128x8xf32>
    %33 = arith.addf %26, %32 : vector<128x8xf32>
    %c0_44 = arith.constant 0 : index
    %c0_45 = arith.constant 0 : index
    %c2 = arith.constant 2 : index
    %c0_46 = arith.constant 0 : index
    %34 = vector.load %arg8[%c0_44, %c0_45, %c2, %c0_46] : memref<2x10x10x8xf32, #tpu.memory_space<vmem>>, vector<2x8x8x8xf32>
    %35 = vector.shape_cast %34 : vector<2x8x8x8xf32> to vector<128x8xf32>
    %36 = arith.truncf %35 : vector<128x8xf32> to vector<128x8xbf16>
    %c0_47 = arith.constant 0 : index
    %c16 = arith.constant 16 : index
    %c0_48 = arith.constant 0 : index
    %37 = vector.load %arg3[%c0_47, %c16, %c0_48] : memref<2x72x8xbf16, #tpu.memory_space<vmem>>, vector<1x8x8xbf16>
    %38 = vector.shape_cast %37 : vector<1x8x8xbf16> to vector<8x8xbf16>
    %cst_49 = arith.constant dense<0.000000e+00> : vector<128x8xf32>
    %39 = tpu.matmul %36, %38, %cst_49 {dimension_numbers = #tpu.dot_dimension_numbers<[1], [0], [0], [1], [0, 0, 1, 1], [], []>} : vector<128x8xbf16>, vector<8x8xbf16>, vector<128x8xf32> -> vector<128x8xf32>
    %40 = arith.addf %33, %39 : vector<128x8xf32>
    %c0_50 = arith.constant 0 : index
    %c1_51 = arith.constant 1 : index
    %c0_52 = arith.constant 0 : index
    %c0_53 = arith.constant 0 : index
    %41 = vector.load %arg8[%c0_50, %c1_51, %c0_52, %c0_53] : memref<2x10x10x8xf32, #tpu.memory_space<vmem>>, vector<2x8x8x8xf32>
    %42 = vector.shape_cast %41 : vector<2x8x8x8xf32> to vector<128x8xf32>
    %43 = arith.truncf %42 : vector<128x8xf32> to vector<128x8xbf16>
    %c0_54 = arith.constant 0 : index
    %c24 = arith.constant 24 : index
    %c0_55 = arith.constant 0 : index
    %44 = vector.load %arg3[%c0_54, %c24, %c0_55] : memref<2x72x8xbf16, #tpu.memory_space<vmem>>, vector<1x8x8xbf16>
    %45 = vector.shape_cast %44 : vector<1x8x8xbf16> to vector<8x8xbf16>
    %cst_56 = arith.constant dense<0.000000e+00> : vector<128x8xf32>
    %46 = tpu.matmul %43, %45, %cst_56 {dimension_numbers = #tpu.dot_dimension_numbers<[1], [0], [0], [1], [0, 0, 1, 1], [], []>} : vector<128x8xbf16>, vector<8x8xbf16>, vector<128x8xf32> -> vector<128x8xf32>
    %47 = arith.addf %40, %46 : vector<128x8xf32>
    %c0_57 = arith.constant 0 : index
    %c1_58 = arith.constant 1 : index
    %c1_59 = arith.constant 1 : index
    %c0_60 = arith.constant 0 : index
    %48 = vector.load %arg8[%c0_57, %c1_58, %c1_59, %c0_60] : memref<2x10x10x8xf32, #tpu.memory_space<vmem>>, vector<2x8x8x8xf32>
    %49 = vector.shape_cast %48 : vector<2x8x8x8xf32> to vector<128x8xf32>
    %50 = arith.truncf %49 : vector<128x8xf32> to vector<128x8xbf16>
    %c0_61 = arith.constant 0 : index
    %c32 = arith.constant 32 : index
    %c0_62 = arith.constant 0 : index
    %51 = vector.load %arg3[%c0_61, %c32, %c0_62] : memref<2x72x8xbf16, #tpu.memory_space<vmem>>, vector<1x8x8xbf16>
    %52 = vector.shape_cast %51 : vector<1x8x8xbf16> to vector<8x8xbf16>
    %cst_63 = arith.constant dense<0.000000e+00> : vector<128x8xf32>
    %53 = tpu.matmul %50, %52, %cst_63 {dimension_numbers = #tpu.dot_dimension_numbers<[1], [0], [0], [1], [0, 0, 1, 1], [], []>} : vector<128x8xbf16>, vector<8x8xbf16>, vector<128x8xf32> -> vector<128x8xf32>
    %54 = arith.addf %47, %53 : vector<128x8xf32>
    %c0_64 = arith.constant 0 : index
    %c1_65 = arith.constant 1 : index
    %c2_66 = arith.constant 2 : index
    %c0_67 = arith.constant 0 : index
    %55 = vector.load %arg8[%c0_64, %c1_65, %c2_66, %c0_67] : memref<2x10x10x8xf32, #tpu.memory_space<vmem>>, vector<2x8x8x8xf32>
    %56 = vector.shape_cast %55 : vector<2x8x8x8xf32> to vector<128x8xf32>
    %57 = arith.truncf %56 : vector<128x8xf32> to vector<128x8xbf16>
    %c0_68 = arith.constant 0 : index
    %c40 = arith.constant 40 : index
    %c0_69 = arith.constant 0 : index
    %58 = vector.load %arg3[%c0_68, %c40, %c0_69] : memref<2x72x8xbf16, #tpu.memory_space<vmem>>, vector<1x8x8xbf16>
    %59 = vector.shape_cast %58 : vector<1x8x8xbf16> to vector<8x8xbf16>
    %cst_70 = arith.constant dense<0.000000e+00> : vector<128x8xf32>
    %60 = tpu.matmul %57, %59, %cst_70 {dimension_numbers = #tpu.dot_dimension_numbers<[1], [0], [0], [1], [0, 0, 1, 1], [], []>} : vector<128x8xbf16>, vector<8x8xbf16>, vector<128x8xf32> -> vector<128x8xf32>
    %61 = arith.addf %54, %60 : vector<128x8xf32>
    %c0_71 = arith.constant 0 : index
    %c2_72 = arith.constant 2 : index
    %c0_73 = arith.constant 0 : index
    %c0_74 = arith.constant 0 : index
    %62 = vector.load %arg8[%c0_71, %c2_72, %c0_73, %c0_74] : memref<2x10x10x8xf32, #tpu.memory_space<vmem>>, vector<2x8x8x8xf32>
    %63 = vector.shape_cast %62 : vector<2x8x8x8xf32> to vector<128x8xf32>
    %64 = arith.truncf %63 : vector<128x8xf32> to vector<128x8xbf16>
    %c0_75 = arith.constant 0 : index
    %c48 = arith.constant 48 : index
    %c0_76 = arith.constant 0 : index
    %65 = vector.load %arg3[%c0_75, %c48, %c0_76] : memref<2x72x8xbf16, #tpu.memory_space<vmem>>, vector<1x8x8xbf16>
    %66 = vector.shape_cast %65 : vector<1x8x8xbf16> to vector<8x8xbf16>
    %cst_77 = arith.constant dense<0.000000e+00> : vector<128x8xf32>
    %67 = tpu.matmul %64, %66, %cst_77 {dimension_numbers = #tpu.dot_dimension_numbers<[1], [0], [0], [1], [0, 0, 1, 1], [], []>} : vector<128x8xbf16>, vector<8x8xbf16>, vector<128x8xf32> -> vector<128x8xf32>
    %68 = arith.addf %61, %67 : vector<128x8xf32>
    %c0_78 = arith.constant 0 : index
    %c2_79 = arith.constant 2 : index
    %c1_80 = arith.constant 1 : index
    %c0_81 = arith.constant 0 : index
    %69 = vector.load %arg8[%c0_78, %c2_79, %c1_80, %c0_81] : memref<2x10x10x8xf32, #tpu.memory_space<vmem>>, vector<2x8x8x8xf32>
    %70 = vector.shape_cast %69 : vector<2x8x8x8xf32> to vector<128x8xf32>
    %71 = arith.truncf %70 : vector<128x8xf32> to vector<128x8xbf16>
    %c0_82 = arith.constant 0 : index
    %c56 = arith.constant 56 : index
    %c0_83 = arith.constant 0 : index
    %72 = vector.load %arg3[%c0_82, %c56, %c0_83] : memref<2x72x8xbf16, #tpu.memory_space<vmem>>, vector<1x8x8xbf16>
    %73 = vector.shape_cast %72 : vector<1x8x8xbf16> to vector<8x8xbf16>
    %cst_84 = arith.constant dense<0.000000e+00> : vector<128x8xf32>
    %74 = tpu.matmul %71, %73, %cst_84 {dimension_numbers = #tpu.dot_dimension_numbers<[1], [0], [0], [1], [0, 0, 1, 1], [], []>} : vector<128x8xbf16>, vector<8x8xbf16>, vector<128x8xf32> -> vector<128x8xf32>
    %75 = arith.addf %68, %74 : vector<128x8xf32>
    %c0_85 = arith.constant 0 : index
    %c2_86 = arith.constant 2 : index
    %c2_87 = arith.constant 2 : index
    %c0_88 = arith.constant 0 : index
    %76 = vector.load %arg8[%c0_85, %c2_86, %c2_87, %c0_88] : memref<2x10x10x8xf32, #tpu.memory_space<vmem>>, vector<2x8x8x8xf32>
    %77 = vector.shape_cast %76 : vector<2x8x8x8xf32> to vector<128x8xf32>
    %78 = arith.truncf %77 : vector<128x8xf32> to vector<128x8xbf16>
    %c0_89 = arith.constant 0 : index
    %c64 = arith.constant 64 : index
    %c0_90 = arith.constant 0 : index
    %79 = vector.load %arg3[%c0_89, %c64, %c0_90] : memref<2x72x8xbf16, #tpu.memory_space<vmem>>, vector<1x8x8xbf16>
    %80 = vector.shape_cast %79 : vector<1x8x8xbf16> to vector<8x8xbf16>
    %cst_91 = arith.constant dense<0.000000e+00> : vector<128x8xf32>
    %81 = tpu.matmul %78, %80, %cst_91 {dimension_numbers = #tpu.dot_dimension_numbers<[1], [0], [0], [1], [0, 0, 1, 1], [], []>} : vector<128x8xbf16>, vector<8x8xbf16>, vector<128x8xf32> -> vector<128x8xf32>
    %82 = arith.addf %75, %81 : vector<128x8xf32>
    %c1_92 = arith.constant 1 : index
    %c0_93 = arith.constant 0 : index
    %83 = vector.load %arg6[%c1_92, %c0_93] : memref<5x128xf32, #tpu.memory_space<vmem>>, vector<1x8xf32>
    %84 = vector.broadcast %83 : vector<1x8xf32> to vector<128x8xf32>
    %85 = arith.addf %82, %84 : vector<128x8xf32>
    %86 = arith.addf %85, %18 : vector<128x8xf32>
    %cst_94 = arith.constant 0.000000e+00 : f32
    %87 = vector.broadcast %cst_94 : f32 to vector<128x8xf32>
    %88 = arith.maximumf %86, %87 : vector<128x8xf32>
    %89 = arith.truncf %88 : vector<128x8xf32> to vector<128x8xbf16>
    %c0_95 = arith.constant 0 : index
    %c0_96 = arith.constant 0 : index
    %90 = vector.load %arg5[%c0_95, %c0_96] : memref<8x128xbf16, #tpu.memory_space<vmem>>, vector<8x128xbf16>
    %cst_97 = arith.constant dense<0.000000e+00> : vector<128x128xf32>
    %91 = tpu.matmul %89, %90, %cst_97 {dimension_numbers = #tpu.dot_dimension_numbers<[1], [0], [0], [1], [0, 0, 1, 1], [], []>} : vector<128x8xbf16>, vector<8x128xbf16>, vector<128x128xf32> -> vector<128x128xf32>
    %c4 = arith.constant 4 : index
    %c0_98 = arith.constant 0 : index
    %92 = vector.load %arg6[%c4, %c0_98] : memref<5x128xf32, #tpu.memory_space<vmem>>, vector<1x128xf32>
    %93 = vector.broadcast %92 : vector<1x128xf32> to vector<128x128xf32>
    %94 = arith.addf %91, %93 : vector<128x128xf32>
    %95 = vector.shape_cast %88 : vector<128x8xf32> to vector<2x8x8x8xf32>
    %c0_99 = arith.constant 0 : index
    %c1_100 = arith.constant 1 : index
    %c1_101 = arith.constant 1 : index
    %c0_102 = arith.constant 0 : index
    %96 = vector.load %arg8[%c0_99, %c1_100, %c1_101, %c0_102] : memref<2x10x10x8xf32, #tpu.memory_space<vmem>>, vector<2x8x8x8xf32>
    tpu.vector_store %arg8[%c0_99, %c1_100, %c1_101, %c0_102], %95 {strides = array<i32>} : memref<2x10x10x8xf32, #tpu.memory_space<vmem>>, vector<2x8x8x8xf32>,
    %c0_103 = arith.constant 0 : index
    %c0_104 = arith.constant 0 : index
    %c0_105 = arith.constant 0 : index
    %c0_106 = arith.constant 0 : index
    %97 = vector.load %arg8[%c0_103, %c0_104, %c0_105, %c0_106] : memref<2x10x10x8xf32, #tpu.memory_space<vmem>>, vector<2x8x8x8xf32>
    %98 = vector.shape_cast %97 : vector<2x8x8x8xf32> to vector<128x8xf32>
    %99 = arith.truncf %98 : vector<128x8xf32> to vector<128x8xbf16>
    %c1_107 = arith.constant 1 : index
    %c0_108 = arith.constant 0 : index
    %c0_109 = arith.constant 0 : index
    %100 = vector.load %arg3[%c1_107, %c0_108, %c0_109] : memref<2x72x8xbf16, #tpu.memory_space<vmem>>, vector<1x8x8xbf16>
    %101 = vector.shape_cast %100 : vector<1x8x8xbf16> to vector<8x8xbf16>
    %cst_110 = arith.constant dense<0.000000e+00> : vector<128x8xf32>
    %102 = tpu.matmul %99, %101, %cst_110 {dimension_numbers = #tpu.dot_dimension_numbers<[1], [0], [0], [1], [0, 0, 1, 1], [], []>} : vector<128x8xbf16>, vector<8x8xbf16>, vector<128x8xf32> -> vector<128x8xf32>
    %c0_111 = arith.constant 0 : index
    %c0_112 = arith.constant 0 : index
    %c1_113 = arith.constant 1 : index
    %c0_114 = arith.constant 0 : index
    %103 = vector.load %arg8[%c0_111, %c0_112, %c1_113, %c0_114] : memref<2x10x10x8xf32, #tpu.memory_space<vmem>>, vector<2x8x8x8xf32>
    %104 = vector.shape_cast %103 : vector<2x8x8x8xf32> to vector<128x8xf32>
    %105 = arith.truncf %104 : vector<128x8xf32> to vector<128x8xbf16>
    %c1_115 = arith.constant 1 : index
    %c8_116 = arith.constant 8 : index
    %c0_117 = arith.constant 0 : index
    %106 = vector.load %arg3[%c1_115, %c8_116, %c0_117] : memref<2x72x8xbf16, #tpu.memory_space<vmem>>, vector<1x8x8xbf16>
    %107 = vector.shape_cast %106 : vector<1x8x8xbf16> to vector<8x8xbf16>
    %cst_118 = arith.constant dense<0.000000e+00> : vector<128x8xf32>
    %108 = tpu.matmul %105, %107, %cst_118 {dimension_numbers = #tpu.dot_dimension_numbers<[1], [0], [0], [1], [0, 0, 1, 1], [], []>} : vector<128x8xbf16>, vector<8x8xbf16>, vector<128x8xf32> -> vector<128x8xf32>
    %109 = arith.addf %102, %108 : vector<128x8xf32>
    %c0_119 = arith.constant 0 : index
    %c0_120 = arith.constant 0 : index
    %c2_121 = arith.constant 2 : index
    %c0_122 = arith.constant 0 : index
    %110 = vector.load %arg8[%c0_119, %c0_120, %c2_121, %c0_122] : memref<2x10x10x8xf32, #tpu.memory_space<vmem>>, vector<2x8x8x8xf32>
    %111 = vector.shape_cast %110 : vector<2x8x8x8xf32> to vector<128x8xf32>
    %112 = arith.truncf %111 : vector<128x8xf32> to vector<128x8xbf16>
    %c1_123 = arith.constant 1 : index
    %c16_124 = arith.constant 16 : index
    %c0_125 = arith.constant 0 : index
    %113 = vector.load %arg3[%c1_123, %c16_124, %c0_125] : memref<2x72x8xbf16, #tpu.memory_space<vmem>>, vector<1x8x8xbf16>
    %114 = vector.shape_cast %113 : vector<1x8x8xbf16> to vector<8x8xbf16>
    %cst_126 = arith.constant dense<0.000000e+00> : vector<128x8xf32>
    %115 = tpu.matmul %112, %114, %cst_126 {dimension_numbers = #tpu.dot_dimension_numbers<[1], [0], [0], [1], [0, 0, 1, 1], [], []>} : vector<128x8xbf16>, vector<8x8xbf16>, vector<128x8xf32> -> vector<128x8xf32>
    %116 = arith.addf %109, %115 : vector<128x8xf32>
    %c0_127 = arith.constant 0 : index
    %c1_128 = arith.constant 1 : index
    %c0_129 = arith.constant 0 : index
    %c0_130 = arith.constant 0 : index
    %117 = vector.load %arg8[%c0_127, %c1_128, %c0_129, %c0_130] : memref<2x10x10x8xf32, #tpu.memory_space<vmem>>, vector<2x8x8x8xf32>
    %118 = vector.shape_cast %117 : vector<2x8x8x8xf32> to vector<128x8xf32>
    %119 = arith.truncf %118 : vector<128x8xf32> to vector<128x8xbf16>
    %c1_131 = arith.constant 1 : index
    %c24_132 = arith.constant 24 : index
    %c0_133 = arith.constant 0 : index
    %120 = vector.load %arg3[%c1_131, %c24_132, %c0_133] : memref<2x72x8xbf16, #tpu.memory_space<vmem>>, vector<1x8x8xbf16>
    %121 = vector.shape_cast %120 : vector<1x8x8xbf16> to vector<8x8xbf16>
    %cst_134 = arith.constant dense<0.000000e+00> : vector<128x8xf32>
    %122 = tpu.matmul %119, %121, %cst_134 {dimension_numbers = #tpu.dot_dimension_numbers<[1], [0], [0], [1], [0, 0, 1, 1], [], []>} : vector<128x8xbf16>, vector<8x8xbf16>, vector<128x8xf32> -> vector<128x8xf32>
    %123 = arith.addf %116, %122 : vector<128x8xf32>
    %c0_135 = arith.constant 0 : index
    %c1_136 = arith.constant 1 : index
    %c1_137 = arith.constant 1 : index
    %c0_138 = arith.constant 0 : index
    %124 = vector.load %arg8[%c0_135, %c1_136, %c1_137, %c0_138] : memref<2x10x10x8xf32, #tpu.memory_space<vmem>>, vector<2x8x8x8xf32>
    %125 = vector.shape_cast %124 : vector<2x8x8x8xf32> to vector<128x8xf32>
    %126 = arith.truncf %125 : vector<128x8xf32> to vector<128x8xbf16>
    %c1_139 = arith.constant 1 : index
    %c32_140 = arith.constant 32 : index
    %c0_141 = arith.constant 0 : index
    %127 = vector.load %arg3[%c1_139, %c32_140, %c0_141] : memref<2x72x8xbf16, #tpu.memory_space<vmem>>, vector<1x8x8xbf16>
    %128 = vector.shape_cast %127 : vector<1x8x8xbf16> to vector<8x8xbf16>
    %cst_142 = arith.constant dense<0.000000e+00> : vector<128x8xf32>
    %129 = tpu.matmul %126, %128, %cst_142 {dimension_numbers = #tpu.dot_dimension_numbers<[1], [0], [0], [1], [0, 0, 1, 1], [], []>} : vector<128x8xbf16>, vector<8x8xbf16>, vector<128x8xf32> -> vector<128x8xf32>
    %130 = arith.addf %123, %129 : vector<128x8xf32>
    %c0_143 = arith.constant 0 : index
    %c1_144 = arith.constant 1 : index
    %c2_145 = arith.constant 2 : index
    %c0_146 = arith.constant 0 : index
    %131 = vector.load %arg8[%c0_143, %c1_144, %c2_145, %c0_146] : memref<2x10x10x8xf32, #tpu.memory_space<vmem>>, vector<2x8x8x8xf32>
    %132 = vector.shape_cast %131 : vector<2x8x8x8xf32> to vector<128x8xf32>
    %133 = arith.truncf %132 : vector<128x8xf32> to vector<128x8xbf16>
    %c1_147 = arith.constant 1 : index
    %c40_148 = arith.constant 40 : index
    %c0_149 = arith.constant 0 : index
    %134 = vector.load %arg3[%c1_147, %c40_148, %c0_149] : memref<2x72x8xbf16, #tpu.memory_space<vmem>>, vector<1x8x8xbf16>
    %135 = vector.shape_cast %134 : vector<1x8x8xbf16> to vector<8x8xbf16>
    %cst_150 = arith.constant dense<0.000000e+00> : vector<128x8xf32>
    %136 = tpu.matmul %133, %135, %cst_150 {dimension_numbers = #tpu.dot_dimension_numbers<[1], [0], [0], [1], [0, 0, 1, 1], [], []>} : vector<128x8xbf16>, vector<8x8xbf16>, vector<128x8xf32> -> vector<128x8xf32>
    %137 = arith.addf %130, %136 : vector<128x8xf32>
    %c0_151 = arith.constant 0 : index
    %c2_152 = arith.constant 2 : index
    %c0_153 = arith.constant 0 : index
    %c0_154 = arith.constant 0 : index
    %138 = vector.load %arg8[%c0_151, %c2_152, %c0_153, %c0_154] : memref<2x10x10x8xf32, #tpu.memory_space<vmem>>, vector<2x8x8x8xf32>
    %139 = vector.shape_cast %138 : vector<2x8x8x8xf32> to vector<128x8xf32>
    %140 = arith.truncf %139 : vector<128x8xf32> to vector<128x8xbf16>
    %c1_155 = arith.constant 1 : index
    %c48_156 = arith.constant 48 : index
    %c0_157 = arith.constant 0 : index
    %141 = vector.load %arg3[%c1_155, %c48_156, %c0_157] : memref<2x72x8xbf16, #tpu.memory_space<vmem>>, vector<1x8x8xbf16>
    %142 = vector.shape_cast %141 : vector<1x8x8xbf16> to vector<8x8xbf16>
    %cst_158 = arith.constant dense<0.000000e+00> : vector<128x8xf32>
    %143 = tpu.matmul %140, %142, %cst_158 {dimension_numbers = #tpu.dot_dimension_numbers<[1], [0], [0], [1], [0, 0, 1, 1], [], []>} : vector<128x8xbf16>, vector<8x8xbf16>, vector<128x8xf32> -> vector<128x8xf32>
    %144 = arith.addf %137, %143 : vector<128x8xf32>
    %c0_159 = arith.constant 0 : index
    %c2_160 = arith.constant 2 : index
    %c1_161 = arith.constant 1 : index
    %c0_162 = arith.constant 0 : index
    %145 = vector.load %arg8[%c0_159, %c2_160, %c1_161, %c0_162] : memref<2x10x10x8xf32, #tpu.memory_space<vmem>>, vector<2x8x8x8xf32>
    %146 = vector.shape_cast %145 : vector<2x8x8x8xf32> to vector<128x8xf32>
    %147 = arith.truncf %146 : vector<128x8xf32> to vector<128x8xbf16>
    %c1_163 = arith.constant 1 : index
    %c56_164 = arith.constant 56 : index
    %c0_165 = arith.constant 0 : index
    %148 = vector.load %arg3[%c1_163, %c56_164, %c0_165] : memref<2x72x8xbf16, #tpu.memory_space<vmem>>, vector<1x8x8xbf16>
    %149 = vector.shape_cast %148 : vector<1x8x8xbf16> to vector<8x8xbf16>
    %cst_166 = arith.constant dense<0.000000e+00> : vector<128x8xf32>
    %150 = tpu.matmul %147, %149, %cst_166 {dimension_numbers = #tpu.dot_dimension_numbers<[1], [0], [0], [1], [0, 0, 1, 1], [], []>} : vector<128x8xbf16>, vector<8x8xbf16>, vector<128x8xf32> -> vector<128x8xf32>
    %151 = arith.addf %144, %150 : vector<128x8xf32>
    %c0_167 = arith.constant 0 : index
    %c2_168 = arith.constant 2 : index
    %c2_169 = arith.constant 2 : index
    %c0_170 = arith.constant 0 : index
    %152 = vector.load %arg8[%c0_167, %c2_168, %c2_169, %c0_170] : memref<2x10x10x8xf32, #tpu.memory_space<vmem>>, vector<2x8x8x8xf32>
    %153 = vector.shape_cast %152 : vector<2x8x8x8xf32> to vector<128x8xf32>
    %154 = arith.truncf %153 : vector<128x8xf32> to vector<128x8xbf16>
    %c1_171 = arith.constant 1 : index
    %c64_172 = arith.constant 64 : index
    %c0_173 = arith.constant 0 : index
    %155 = vector.load %arg3[%c1_171, %c64_172, %c0_173] : memref<2x72x8xbf16, #tpu.memory_space<vmem>>, vector<1x8x8xbf16>
    %156 = vector.shape_cast %155 : vector<1x8x8xbf16> to vector<8x8xbf16>
    %cst_174 = arith.constant dense<0.000000e+00> : vector<128x8xf32>
    %157 = tpu.matmul %154, %156, %cst_174 {dimension_numbers = #tpu.dot_dimension_numbers<[1], [0], [0], [1], [0, 0, 1, 1], [], []>} : vector<128x8xbf16>, vector<8x8xbf16>, vector<128x8xf32> -> vector<128x8xf32>
    %158 = arith.addf %151, %157 : vector<128x8xf32>
    %c2_175 = arith.constant 2 : index
    %c0_176 = arith.constant 0 : index
    %159 = vector.load %arg6[%c2_175, %c0_176] : memref<5x128xf32, #tpu.memory_space<vmem>>, vector<1x8xf32>
    %160 = vector.broadcast %159 : vector<1x8xf32> to vector<128x8xf32>
    %161 = arith.addf %158, %160 : vector<128x8xf32>
    %cst_177 = arith.constant 0.000000e+00 : f32
    %162 = vector.broadcast %cst_177 : f32 to vector<128x8xf32>
    %163 = arith.maximumf %161, %162 : vector<128x8xf32>
    %164 = vector.shape_cast %163 : vector<128x8xf32> to vector<2x8x8x8xf32>
    %c0_178 = arith.constant 0 : index
    %c1_179 = arith.constant 1 : index
    %c1_180 = arith.constant 1 : index
    %c0_181 = arith.constant 0 : index
    %165 = vector.load %arg8[%c0_178, %c1_179, %c1_180, %c0_181] : memref<2x10x10x8xf32, #tpu.memory_space<vmem>>, vector<2x8x8x8xf32>
    tpu.vector_store %arg8[%c0_178, %c1_179, %c1_180, %c0_181], %164 {strides = array<i32>} : memref<2x10x10x8xf32, #tpu.memory_space<vmem>>, vector<2x8x8x8xf32>,
    %c0_182 = arith.constant 0 : index
    %c0_183 = arith.constant 0 : index
    %c0_184 = arith.constant 0 : index
    %c0_185 = arith.constant 0 : index
    %166 = vector.load %arg8[%c0_182, %c0_183, %c0_184, %c0_185] : memref<2x10x10x8xf32, #tpu.memory_space<vmem>>, vector<2x8x8x8xf32>
    %167 = vector.shape_cast %166 : vector<2x8x8x8xf32> to vector<128x8xf32>
    %168 = arith.truncf %167 : vector<128x8xf32> to vector<128x8xbf16>
    %c0_186 = arith.constant 0 : index
    %c0_187 = arith.constant 0 : index
    %169 = vector.load %arg4[%c0_186, %c0_187] : memref<72x128xbf16, #tpu.memory_space<vmem>>, vector<8x128xbf16>
    %cst_188 = arith.constant dense<0.000000e+00> : vector<128x128xf32>
    %170 = tpu.matmul %168, %169, %cst_188 {dimension_numbers = #tpu.dot_dimension_numbers<[1], [0], [0], [1], [0, 0, 1, 1], [], []>} : vector<128x8xbf16>, vector<8x128xbf16>, vector<128x128xf32> -> vector<128x128xf32>
    %c0_189 = arith.constant 0 : index
    %c0_190 = arith.constant 0 : index
    %c1_191 = arith.constant 1 : index
    %c0_192 = arith.constant 0 : index
    %171 = vector.load %arg8[%c0_189, %c0_190, %c1_191, %c0_192] : memref<2x10x10x8xf32, #tpu.memory_space<vmem>>, vector<2x8x8x8xf32>
    %172 = vector.shape_cast %171 : vector<2x8x8x8xf32> to vector<128x8xf32>
    %173 = arith.truncf %172 : vector<128x8xf32> to vector<128x8xbf16>
    %c8_193 = arith.constant 8 : index
    %c0_194 = arith.constant 0 : index
    %174 = vector.load %arg4[%c8_193, %c0_194] : memref<72x128xbf16, #tpu.memory_space<vmem>>, vector<8x128xbf16>
    %cst_195 = arith.constant dense<0.000000e+00> : vector<128x128xf32>
    %175 = tpu.matmul %173, %174, %cst_195 {dimension_numbers = #tpu.dot_dimension_numbers<[1], [0], [0], [1], [0, 0, 1, 1], [], []>} : vector<128x8xbf16>, vector<8x128xbf16>, vector<128x128xf32> -> vector<128x128xf32>
    %176 = arith.addf %170, %175 : vector<128x128xf32>
    %c0_196 = arith.constant 0 : index
    %c0_197 = arith.constant 0 : index
    %c2_198 = arith.constant 2 : index
    %c0_199 = arith.constant 0 : index
    %177 = vector.load %arg8[%c0_196, %c0_197, %c2_198, %c0_199] : memref<2x10x10x8xf32, #tpu.memory_space<vmem>>, vector<2x8x8x8xf32>
    %178 = vector.shape_cast %177 : vector<2x8x8x8xf32> to vector<128x8xf32>
    %179 = arith.truncf %178 : vector<128x8xf32> to vector<128x8xbf16>
    %c16_200 = arith.constant 16 : index
    %c0_201 = arith.constant 0 : index
    %180 = vector.load %arg4[%c16_200, %c0_201] : memref<72x128xbf16, #tpu.memory_space<vmem>>, vector<8x128xbf16>
    %cst_202 = arith.constant dense<0.000000e+00> : vector<128x128xf32>
    %181 = tpu.matmul %179, %180, %cst_202 {dimension_numbers = #tpu.dot_dimension_numbers<[1], [0], [0], [1], [0, 0, 1, 1], [], []>} : vector<128x8xbf16>, vector<8x128xbf16>, vector<128x128xf32> -> vector<128x128xf32>
    %182 = arith.addf %176, %181 : vector<128x128xf32>
    %c0_203 = arith.constant 0 : index
    %c1_204 = arith.constant 1 : index
    %c0_205 = arith.constant 0 : index
    %c0_206 = arith.constant 0 : index
    %183 = vector.load %arg8[%c0_203, %c1_204, %c0_205, %c0_206] : memref<2x10x10x8xf32, #tpu.memory_space<vmem>>, vector<2x8x8x8xf32>
    %184 = vector.shape_cast %183 : vector<2x8x8x8xf32> to vector<128x8xf32>
    %185 = arith.truncf %184 : vector<128x8xf32> to vector<128x8xbf16>
    %c24_207 = arith.constant 24 : index
    %c0_208 = arith.constant 0 : index
    %186 = vector.load %arg4[%c24_207, %c0_208] : memref<72x128xbf16, #tpu.memory_space<vmem>>, vector<8x128xbf16>
    %cst_209 = arith.constant dense<0.000000e+00> : vector<128x128xf32>
    %187 = tpu.matmul %185, %186, %cst_209 {dimension_numbers = #tpu.dot_dimension_numbers<[1], [0], [0], [1], [0, 0, 1, 1], [], []>} : vector<128x8xbf16>, vector<8x128xbf16>, vector<128x128xf32> -> vector<128x128xf32>
    %188 = arith.addf %182, %187 : vector<128x128xf32>
    %c0_210 = arith.constant 0 : index
    %c1_211 = arith.constant 1 : index
    %c1_212 = arith.constant 1 : index
    %c0_213 = arith.constant 0 : index
    %189 = vector.load %arg8[%c0_210, %c1_211, %c1_212, %c0_213] : memref<2x10x10x8xf32, #tpu.memory_space<vmem>>, vector<2x8x8x8xf32>
    %190 = vector.shape_cast %189 : vector<2x8x8x8xf32> to vector<128x8xf32>
    %191 = arith.truncf %190 : vector<128x8xf32> to vector<128x8xbf16>
    %c32_214 = arith.constant 32 : index
    %c0_215 = arith.constant 0 : index
    %192 = vector.load %arg4[%c32_214, %c0_215] : memref<72x128xbf16, #tpu.memory_space<vmem>>, vector<8x128xbf16>
    %cst_216 = arith.constant dense<0.000000e+00> : vector<128x128xf32>
    %193 = tpu.matmul %191, %192, %cst_216 {dimension_numbers = #tpu.dot_dimension_numbers<[1], [0], [0], [1], [0, 0, 1, 1], [], []>} : vector<128x8xbf16>, vector<8x128xbf16>, vector<128x128xf32> -> vector<128x128xf32>
    %194 = arith.addf %188, %193 : vector<128x128xf32>
    %c0_217 = arith.constant 0 : index
    %c1_218 = arith.constant 1 : index
    %c2_219 = arith.constant 2 : index
    %c0_220 = arith.constant 0 : index
    %195 = vector.load %arg8[%c0_217, %c1_218, %c2_219, %c0_220] : memref<2x10x10x8xf32, #tpu.memory_space<vmem>>, vector<2x8x8x8xf32>
    %196 = vector.shape_cast %195 : vector<2x8x8x8xf32> to vector<128x8xf32>
    %197 = arith.truncf %196 : vector<128x8xf32> to vector<128x8xbf16>
    %c40_221 = arith.constant 40 : index
    %c0_222 = arith.constant 0 : index
    %198 = vector.load %arg4[%c40_221, %c0_222] : memref<72x128xbf16, #tpu.memory_space<vmem>>, vector<8x128xbf16>
    %cst_223 = arith.constant dense<0.000000e+00> : vector<128x128xf32>
    %199 = tpu.matmul %197, %198, %cst_223 {dimension_numbers = #tpu.dot_dimension_numbers<[1], [0], [0], [1], [0, 0, 1, 1], [], []>} : vector<128x8xbf16>, vector<8x128xbf16>, vector<128x128xf32> -> vector<128x128xf32>
    %200 = arith.addf %194, %199 : vector<128x128xf32>
    %c0_224 = arith.constant 0 : index
    %c2_225 = arith.constant 2 : index
    %c0_226 = arith.constant 0 : index
    %c0_227 = arith.constant 0 : index
    %201 = vector.load %arg8[%c0_224, %c2_225, %c0_226, %c0_227] : memref<2x10x10x8xf32, #tpu.memory_space<vmem>>, vector<2x8x8x8xf32>
    %202 = vector.shape_cast %201 : vector<2x8x8x8xf32> to vector<128x8xf32>
    %203 = arith.truncf %202 : vector<128x8xf32> to vector<128x8xbf16>
    %c48_228 = arith.constant 48 : index
    %c0_229 = arith.constant 0 : index
    %204 = vector.load %arg4[%c48_228, %c0_229] : memref<72x128xbf16, #tpu.memory_space<vmem>>, vector<8x128xbf16>
    %cst_230 = arith.constant dense<0.000000e+00> : vector<128x128xf32>
    %205 = tpu.matmul %203, %204, %cst_230 {dimension_numbers = #tpu.dot_dimension_numbers<[1], [0], [0], [1], [0, 0, 1, 1], [], []>} : vector<128x8xbf16>, vector<8x128xbf16>, vector<128x128xf32> -> vector<128x128xf32>
    %206 = arith.addf %200, %205 : vector<128x128xf32>
    %c0_231 = arith.constant 0 : index
    %c2_232 = arith.constant 2 : index
    %c1_233 = arith.constant 1 : index
    %c0_234 = arith.constant 0 : index
    %207 = vector.load %arg8[%c0_231, %c2_232, %c1_233, %c0_234] : memref<2x10x10x8xf32, #tpu.memory_space<vmem>>, vector<2x8x8x8xf32>
    %208 = vector.shape_cast %207 : vector<2x8x8x8xf32> to vector<128x8xf32>
    %209 = arith.truncf %208 : vector<128x8xf32> to vector<128x8xbf16>
    %c56_235 = arith.constant 56 : index
    %c0_236 = arith.constant 0 : index
    %210 = vector.load %arg4[%c56_235, %c0_236] : memref<72x128xbf16, #tpu.memory_space<vmem>>, vector<8x128xbf16>
    %cst_237 = arith.constant dense<0.000000e+00> : vector<128x128xf32>
    %211 = tpu.matmul %209, %210, %cst_237 {dimension_numbers = #tpu.dot_dimension_numbers<[1], [0], [0], [1], [0, 0, 1, 1], [], []>} : vector<128x8xbf16>, vector<8x128xbf16>, vector<128x128xf32> -> vector<128x128xf32>
    %212 = arith.addf %206, %211 : vector<128x128xf32>
    %c0_238 = arith.constant 0 : index
    %c2_239 = arith.constant 2 : index
    %c2_240 = arith.constant 2 : index
    %c0_241 = arith.constant 0 : index
    %213 = vector.load %arg8[%c0_238, %c2_239, %c2_240, %c0_241] : memref<2x10x10x8xf32, #tpu.memory_space<vmem>>, vector<2x8x8x8xf32>
    %214 = vector.shape_cast %213 : vector<2x8x8x8xf32> to vector<128x8xf32>
    %215 = arith.truncf %214 : vector<128x8xf32> to vector<128x8xbf16>
    %c64_242 = arith.constant 64 : index
    %c0_243 = arith.constant 0 : index
    %216 = vector.load %arg4[%c64_242, %c0_243] : memref<72x128xbf16, #tpu.memory_space<vmem>>, vector<8x128xbf16>
    %cst_244 = arith.constant dense<0.000000e+00> : vector<128x128xf32>
    %217 = tpu.matmul %215, %216, %cst_244 {dimension_numbers = #tpu.dot_dimension_numbers<[1], [0], [0], [1], [0, 0, 1, 1], [], []>} : vector<128x8xbf16>, vector<8x128xbf16>, vector<128x128xf32> -> vector<128x128xf32>
    %218 = arith.addf %212, %217 : vector<128x128xf32>
    %c3 = arith.constant 3 : index
    %c0_245 = arith.constant 0 : index
    %219 = vector.load %arg6[%c3, %c0_245] : memref<5x128xf32, #tpu.memory_space<vmem>>, vector<1x128xf32>
    %220 = vector.broadcast %219 : vector<1x128xf32> to vector<128x128xf32>
    %221 = arith.addf %218, %220 : vector<128x128xf32>
    %222 = arith.addf %221, %94 : vector<128x128xf32>
    %cst_246 = arith.constant 0.000000e+00 : f32
    %223 = vector.broadcast %cst_246 : f32 to vector<128x128xf32>
    %224 = arith.maximumf %222, %223 : vector<128x128xf32>
    %225 = vector.shape_cast %224 : vector<128x128xf32> to vector<2x64x128xf32>
    %c0_247 = arith.constant 0 : index
    %c0_248 = arith.constant 0 : index
    %c0_249 = arith.constant 0 : index
    %226 = vector.load %arg7[%c0_247, %c0_248, %c0_249] : memref<2x64x128xf32, #tpu.memory_space<vmem>>, vector<2x64x128xf32>
    tpu.vector_store %arg7[%c0_247, %c0_248, %c0_249], %225 {strides = array<i32>} : memref<2x64x128xf32, #tpu.memory_space<vmem>>, vector<2x64x128xf32>,
    return
  }
  func.func @transform_0(%arg0: i32) -> (i32, i32, i32) {
    %c0_i32 = arith.constant 0 : i32
    %c0_i32_0 = arith.constant 0 : i32
    %c0_i32_1 = arith.constant 0 : i32
    return %arg0, %c0_i32, %c0_i32_0 : i32, i32, i32
  }
  func.func @transform_1(%arg0: i32) -> (i32, i32) {
    %c0_i32 = arith.constant 0 : i32
    %c0_i32_0 = arith.constant 0 : i32
    %c0_i32_1 = arith.constant 0 : i32
    return %c0_i32, %c0_i32_0 : i32, i32
  }
  func.func @transform_2(%arg0: i32) -> (i32, i32, i32) {
    %c0_i32 = arith.constant 0 : i32
    %c0_i32_0 = arith.constant 0 : i32
    %c0_i32_1 = arith.constant 0 : i32
    %c0_i32_2 = arith.constant 0 : i32
    return %c0_i32, %c0_i32_0, %c0_i32_1 : i32, i32, i32
  }
  func.func @transform_3(%arg0: i32) -> (i32, i32) {
    %c0_i32 = arith.constant 0 : i32
    %c0_i32_0 = arith.constant 0 : i32
    %c0_i32_1 = arith.constant 0 : i32
    return %c0_i32, %c0_i32_0 : i32, i32
  }
  func.func @transform_4(%arg0: i32) -> (i32, i32) {
    %c0_i32 = arith.constant 0 : i32
    %c0_i32_0 = arith.constant 0 : i32
    %c0_i32_1 = arith.constant 0 : i32
    return %c0_i32, %c0_i32_0 : i32, i32
  }
  func.func @transform_5(%arg0: i32) -> (i32, i32) {
    %c0_i32 = arith.constant 0 : i32
    %c0_i32_0 = arith.constant 0 : i32
    %c0_i32_1 = arith.constant 0 : i32
    return %c0_i32, %c0_i32_0 : i32, i32
  }
  func.func @transform_6(%arg0: i32) -> (i32, i32, i32) {
    %c0_i32 = arith.constant 0 : i32
    %c0_i32_0 = arith.constant 0 : i32
    %c0_i32_1 = arith.constant 0 : i32
    return %arg0, %c0_i32, %c0_i32_0 : i32, i32, i32
  }
}

</mosaic_0001>

<bundles_post_ra>
// kernel: tpu_custom_call.1
= control target key start
LH: loop header
LB: loop body
LE: loop exit
PB: predicated region body
PF: predicated region fallthrough
CT: control target
= control target key end

     0   :  { %vm158_vm0 = vcmask 293888   ;;  %vm183_vm1 = vcmask 1041408   ;;  %vm391_vm2 = vcmask 1043456   ;;  %s8008_s0 = inlined_call_operand.vmem [shape: bf16[2,64,36], index: 0, kind: input, shape index: {}]   ;;  %s8009_s1 = inlined_call_operand.vmem [shape: bf16[36,16], index: 1, kind: input, shape index: {}]   ;;  %s8010_s2 = inlined_call_operand.vmem [shape: bf16[2,72,8], index: 2, kind: input, shape index: {}]   ;;  %s8011_s3 = inlined_call_operand.vmem [shape: bf16[72,128], index: 3, kind: input, shape index: {}]   ;;  %s8012_s4 = inlined_call_operand.vmem [shape: bf16[8,128], index: 4, kind: input, shape index: {}]   ;;  %s8013_s5 = inlined_call_operand.vmem [shape: f32[5,128], index: 5, kind: input, shape index: {}]   ;;  %s8014_s6 = inlined_call_operand.hbm [shape: f32[2,64,128], index: 6, kind: output, shape index: {}]  }
   0x1   :  { %v6603_v0 = vld [vmem:[%s8009_s1] sm:$0xff]   ;;  %v6604_v1 = vld [vmem:[%s8009_s1 + $0x8] sm:$0xff]   ;;  %v6605_v2 = vld [vmem:[%s8009_s1 + $0x10] ss:$0 sps:$4 sm:$0x33]  }
   0x2   :  { %5608 = vmatprep.subr.bf16.mxu1 %v6603_v0  ;;  %v6606_v3 = vld [vmem:[%s8008_s0] sm:$0xff]   ;;  %v185_v4 = vsel %vm183_vm1, %v6605_v2, 0  ;;  %v6607_v5 = vld [vmem:[%s8008_s0 + $0x8] sm:$0xff]   ;;  %v6608_v7 = vld [vmem:[%s8008_s0 + $0x10] sm:$0xff]  }
   0x3   :  { %5609 = vmatpush3.bf16.msra.mxu1 %v6603_v0  ;;  %5614 = vmatprep.mubr.msk.bf16.mxu1 %vm158_vm0, %v6606_v3  ;;  %v366_v6 = vld [vmem:[%s8010_s2 + $0x4] sm:$0xf] }
   0x4   :  { %5610 = vmatprep.subr.bf16.mxu1 %v6604_v1 }
   0x7   :  { %5611 = vmatpush3.bf16.msra.mxu1 %v6604_v1 }
   0x8   :  { %6568 = vmatprep.subr.msk.bf16.mxu1 %vm183_vm1, %v6605_v2 }
   0xb   :  { %5613 = vmatpush3.bf16.msra.mxu1 %v185_v4 }
   0xc   :  { %11 = vsyncpa [#allocation4], 0  ;;  %6569 = vmatprep.subr.msk.bf16.mxu1 %vm391_vm2, %v366_v6  ;;  %v393_v8 = vsel %vm391_vm2, %v366_v6, 0  ;;  %v6609_v9 = vld [vmem:[%s8008_s0 + $0x18] sm:$0xff]   ;;  %v6610_v10 = vld [vmem:[%s8008_s0 + $0x20] sm:$0xff]   ;;  %vm25_vm3 = vcmask 64512  }
   0xd   :  { %v6611_v11 = vld [vmem:[%s8008_s0 + $0x28] sm:$0xff]   ;;  %v6612_v12 = vld [vmem:[%s8008_s0 + $0x30] sm:$0xff]   ;;  %v6613_v13 = vld [vmem:[%s8008_s0 + $0x38] sm:$0xff]   ;;  %vm27_vm4 = vcmask 58368   ;;  %vm36_vm5 = vcmask 57344   ;;  %v6638_v14 = vmov 0.0  }
   0xe   :  { %5615 = vmatmul.mubr.msk.bf16.vlgmr.msra.gmra.mrb[0].mxu1 %vm158_vm0, %v6607_v5  ;;  %26 = vst.msk [vmem:[#allocation2] sm:$0xff] %vm25_vm3, %v6638_v14  ;;  %29 = vst.msk [vmem:[#allocation2 + $0xa0] sm:$0xff] %vm25_vm3, %v6638_v14  ;;  %v341_v15 = vld [vmem:[%s8010_s2] sm:$0xf]  ;;  %s6639_s23 = smov 120  }
   0xf   :  { %5618 = vmatprep.mubr.msk.bf16.mxu1 %vm158_vm0, %v6608_v7  ;;  %5631 = vmatpush3.bf16.msra.mxu1 %v393_v8  ;;  %28 = vst.msk [vmem:[#allocation2 + $0x8] sm:$0x3] %vm27_vm4, %v6638_v14  ;;  %30 = vst.msk [vmem:[#allocation2 + $0xa8] sm:$0x3] %vm27_vm4, %v6638_v14  ;;  %v6775_v16 = vld [vmem:[%s8013_s5] ss:$0 sm:$0xff] }
  0x10   :  { %32 = vst.msk [vmem:[#allocation2 + $0x90] sm:$0xff] %vm25_vm3, %v6638_v14  ;;  %34 = vst.msk [vmem:[#allocation2 + $0x130] sm:$0xff] %vm25_vm3, %v6638_v14  ;;  %6570 = vmatprep.subr.msk.bf16.mxu1 %vm391_vm2, %v341_v15  ;;  %v517_v48 = vsel %vm391_vm2, %v341_v15, 0  ;;  %v6817_v51 = vld [vmem:[%s8010_s2 + $0x8] sm:$0xf] }
  0x11   :  { %33 = vst.msk [vmem:[#allocation2 + $0x98] sm:$0x3] %vm27_vm4, %v6638_v14  ;;  %35 = vst.msk [vmem:[#allocation2 + $0x138] sm:$0x3] %vm27_vm4, %v6638_v14 }
  0x12   :  { %38 = vst.msk [vmem:[#allocation2 + $0x10] sm:$0x1] %vm36_vm5, %v6638_v14  ;;  %39 = vst.msk [vmem:[#allocation2 + $0x20] sm:$0x1] %vm36_vm5, %v6638_v14 }
  0x13   :  { %40 = vst.msk [vmem:[#allocation2 + $0x30] sm:$0x1] %vm36_vm5, %v6638_v14  ;;  %41 = vst.msk [vmem:[#allocation2 + $0x40] sm:$0x1] %vm36_vm5, %v6638_v14 }
  0x14   :  { %42 = vst.msk [vmem:[#allocation2 + $0x50] sm:$0x1] %vm36_vm5, %v6638_v14  ;;  %43 = vst.msk [vmem:[#allocation2 + $0x60] sm:$0x1] %vm36_vm5, %v6638_v14 }
  0x15   :  { %44 = vst.msk [vmem:[#allocation2 + $0x70] sm:$0x1] %vm36_vm5, %v6638_v14  ;;  %45 = vst.msk [vmem:[#allocation2 + $0x80] sm:$0x1] %vm36_vm5, %v6638_v14 }
  0x16   :  { %5619 = vmatmul.mubr.msk.bf16.gmra.mrb[4].mxu1 %vm158_vm0, %v6609_v9  ;;  %48 = vst.msk [vmem:[#allocation2 + $0xb0] sm:$0x1] %vm36_vm5, %v6638_v14  ;;  %49 = vst.msk [vmem:[#allocation2 + $0xc0] sm:$0x1] %vm36_vm5, %v6638_v14  ;;  %v342_v37 = vld [vmem:[#allocation2 + $0x1] sm:$0xff] }
  0x17   :  { %5622 = vmatprep.mubr.msk.bf16.mxu1 %vm158_vm0, %v6610_v10  ;;  %50 = vst.msk [vmem:[#allocation2 + $0xd0] sm:$0x1] %vm36_vm5, %v6638_v14  ;;  %51 = vst.msk [vmem:[#allocation2 + $0xe0] sm:$0x1] %vm36_vm5, %v6638_v14 }
  0x18   :  { %52 = vst.msk [vmem:[#allocation2 + $0xf0] sm:$0x1] %vm36_vm5, %v6638_v14  ;;  %53 = vst.msk [vmem:[#allocation2 + $0x100] sm:$0x1] %vm36_vm5, %v6638_v14 }
  0x19   :  { %54 = vst.msk [vmem:[#allocation2 + $0x110] sm:$0x1] %vm36_vm5, %v6638_v14  ;;  %55 = vst.msk [vmem:[#allocation2 + $0x120] sm:$0x1] %vm36_vm5, %v6638_v14 }
  0x1a   :  { %58 = vst.msk [vmem:[#allocation2 + $0x19] sm:$0x1] %vm36_vm5, %v6638_v14  ;;  %59 = vst.msk [vmem:[#allocation2 + $0x29] sm:$0x1] %vm36_vm5, %v6638_v14 }
  0x1b   :  { %60 = vst.msk [vmem:[#allocation2 + $0x39] sm:$0x1] %vm36_vm5, %v6638_v14  ;;  %61 = vst.msk [vmem:[#allocation2 + $0x49] sm:$0x1] %vm36_vm5, %v6638_v14 }
  0x1c   :  { %62 = vst.msk [vmem:[#allocation2 + $0x59] sm:$0x1] %vm36_vm5, %v6638_v14  ;;  %63 = vst.msk [vmem:[#allocation2 + $0x69] sm:$0x1] %vm36_vm5, %v6638_v14 }
  0x1d   :  { %64 = vst.msk [vmem:[#allocation2 + $0x79] sm:$0x1] %vm36_vm5, %v6638_v14  ;;  %65 = vst.msk [vmem:[#allocation2 + $0x89] sm:$0x1] %vm36_vm5, %v6638_v14 }
  0x1e   :  { %5623 = vmatmul.mubr.msk.bf16.gmra.mrb[8].mxu1 %vm158_vm0, %v6611_v11  ;;  %68 = vst.msk [vmem:[#allocation2 + $0xb9] sm:$0x1] %vm36_vm5, %v6638_v14  ;;  %69 = vst.msk [vmem:[#allocation2 + $0xc9] sm:$0x1] %vm36_vm5, %v6638_v14  ;;  %v350_v11 = vld [vmem:[#allocation2 + $0xa1] sm:$0xff] }
  0x1f   :  { %5626 = vmatprep.mubr.msk.bf16.mxu1 %vm158_vm0, %v6612_v12  ;;  %70 = vst.msk [vmem:[#allocation2 + $0xd9] sm:$0x1] %vm36_vm5, %v6638_v14  ;;  %71 = vst.msk [vmem:[#allocation2 + $0xe9] sm:$0x1] %vm36_vm5, %v6638_v14 }
  0x20   :  { %72 = vst.msk [vmem:[#allocation2 + $0xf9] sm:$0x1] %vm36_vm5, %v6638_v14  ;;  %73 = vst.msk [vmem:[#allocation2 + $0x109] sm:$0x1] %vm36_vm5, %v6638_v14 }
  0x21   :  { %74 = vst.msk [vmem:[#allocation2 + $0x119] sm:$0x1] %vm36_vm5, %v6638_v14  ;;  %75 = vst.msk [vmem:[#allocation2 + $0x129] sm:$0x1] %vm36_vm5, %v6638_v14 }
  0x22   :  { %37 = vst.msk [vmem:[#allocation2] sm:$0x1] %vm36_vm5, %v6638_v14  ;;  %46 = vst.msk [vmem:[#allocation2 + $0x90] sm:$0x1] %vm36_vm5, %v6638_v14 }
  0x23   :  { %47 = vst.msk [vmem:[#allocation2 + $0xa0] sm:$0x1] %vm36_vm5, %v6638_v14  ;;  %56 = vst.msk [vmem:[#allocation2 + $0x130] sm:$0x1] %vm36_vm5, %v6638_v14 }
  0x24   :  { %57 = vst.msk [vmem:[#allocation2 + $0x9] sm:$0x1] %vm36_vm5, %v6638_v14  ;;  %66 = vst.msk [vmem:[#allocation2 + $0x99] sm:$0x1] %vm36_vm5, %v6638_v14 }
  0x25   :  { %67 = vst.msk [vmem:[#allocation2 + $0xa9] sm:$0x1] %vm36_vm5, %v6638_v14  ;;  %76 = vst.msk [vmem:[#allocation2 + $0x139] sm:$0x1] %vm36_vm5, %v6638_v14 }
  0x26   :  { %5627 = vmatmul.mubr.msk.bf16.gmra.mrb[12].mxu1 %vm158_vm0, %v6613_v13 }
  0xe1   :  { %v5616_v17 = vpop.f32.mrb[0].mxu1 }
  0xe2   :  { %v230_v18 = vadd.f32 %v5616_v17, %v6775_v16  ;;  %v221_v19 = vpop.f32.mrb[1].mxu1 }
  0xe3   :  { %v222_v20 = vadd.f32 %v6775_v16, %v221_v19  ;;  %v5617_v21 = vpop.f32.mrb[2].mxu1 }
  0xe4   :  { %v286_v22 = vmax.f32 %v230_v18, 0.0  ;;  %v233_v23 = vadd.f32 %v5617_v21, %v6775_v16  ;;  %1813 = vrot.lane.b32.xlu1 %v230_v18, %s6639_s23  ;;  %v224_v24 = vpop.f32.mrb[3].mxu1 }
  0xe5   :  { %v284_v25 = vmax.f32 %v222_v20, 0.0  ;;  %v225_v26 = vadd.f32 %v6775_v16, %v224_v24  ;;  %1809 = vrot.lane.b32.xlu0 %v222_v20, %s6639_s23  ;;  %v317_v24 = vld [vmem:[#allocation2] sm:$0xff] }
  0xe6   :  { %303 = vst.msk [vmem:[#allocation2 + $0x31] sm:$0xff] %vm25_vm3, %v286_v22  ;;  %v287_v27 = vmax.f32 %v233_v23, 0.0 }
  0xe7   :  { %301 = vst.msk [vmem:[#allocation2 + $0x11] sm:$0xff] %vm25_vm3, %v284_v25  ;;  %v285_v28 = vmax.f32 %v225_v26, 0.0 }
  0xe8   :  { %304 = vst.msk [vmem:[#allocation2 + $0x41] sm:$0xff] %vm25_vm3, %v287_v27  ;;  %1815 = vrot.lane.b32.xlu1 %v233_v23, %s6639_s23 }
  0xe9   :  { %302 = vst.msk [vmem:[#allocation2 + $0x21] sm:$0xff] %vm25_vm3, %v285_v28  ;;  %v5620_v29 = vpop.f32.mrb[4].mxu1  ;;  %1811 = vrot.lane.b32.xlu0 %v225_v26, %s6639_s23 }
  0xea   :  { %v246_v30 = vadd.f32 %v5620_v29, %v6775_v16  ;;  %v237_v31 = vpop.f32.mrb[5].mxu1 }
  0xeb   :  { %v238_v32 = vadd.f32 %v6775_v16, %v237_v31  ;;  %v5621_v33 = vpop.f32.mrb[6].mxu1 }
  0xec   :  { %v290_v34 = vmax.f32 %v246_v30, 0.0  ;;  %v249_v35 = vadd.f32 %v5621_v33, %v6775_v16  ;;  %v240_v36 = vpop.f32.mrb[7].mxu1 }
  0xed   :  { %v288_v38 = vmax.f32 %v238_v32, 0.0  ;;  %v241_v39 = vadd.f32 %v6775_v16, %v240_v36  ;;  %1817 = vrot.lane.b32.xlu0 %v238_v32, %s6639_s23  ;;  %v6803_v45 = vld [vmem:[#allocation2 + $0x31] sm:$0xff] }
  0xee   :  { %307 = vst.msk [vmem:[#allocation2 + $0x71] sm:$0xff] %vm25_vm3, %v290_v34  ;;  %v291_v40 = vmax.f32 %v249_v35, 0.0  ;;  %v6795_v41 = vld [vmem:[#allocation2 + $0x11] sm:$0xff]  ;;  %v666_v34 = vsel %vm391_vm2, %v6817_v51, 0 }
  0xef   :  { %305 = vst.msk [vmem:[#allocation2 + $0x51] sm:$0xff] %vm25_vm3, %v288_v38  ;;  %v289_v42 = vmax.f32 %v241_v39, 0.0  ;;  %1819 = vrot.lane.b32.xlu1 %v241_v39, %s6639_s23  ;;  %v358_v43 = vpack.c.bf16 %v6795_v41, %v342_v37  ;;  %v6829_v60 = vld [vmem:[#allocation2 + $0x41] sm:$0xff]  ;;  %v6889_v25 = vld [vmem:[#allocation2 + $0x10] sm:$0xff]  ;;  %v805_v37 = vld [vmem:[%s8010_s2 + $0xc] sm:$0xf] }
  0xf0   :  { %308 = vst.msk [vmem:[#allocation2 + $0x81] sm:$0xff] %vm25_vm3, %v291_v40  ;;  %v6801_v44 = vld [vmem:[#allocation2 + $0x21] sm:$0xff]  ;;  %v333_v29 = vpack.c.bf16 %v6889_v25, %v317_v24  ;;  %v6909_v32 = vld [vmem:[#allocation2 + $0x30] sm:$0xff] }
  0xf1   :  { %306 = vst.msk [vmem:[#allocation2 + $0x61] sm:$0xff] %vm25_vm3, %v289_v42  ;;  %v5624_v46 = vpop.f32.mrb[8].mxu1  ;;  %1821 = vrot.lane.b32.xlu0 %v246_v30, %s6639_s23  ;;  %5632 = vmatprep.mubr.msk.bf16.mxu1 %vm25_vm3, %v358_v43  ;;  %v6810_v47 = vpack.c.bf16 %v6803_v45, %v6801_v44  ;;  %v6905_v30 = vld [vmem:[#allocation2 + $0x20] sm:$0xff] }
  0xf2   :  { %v262_v49 = vadd.f32 %v5624_v46, %v6775_v16  ;;  %v253_v50 = vpop.f32.mrb[9].mxu1  ;;  %v6913_v33 = vpack.c.bf16 %v6909_v32, %v6905_v30  ;;  %v325_v39 = vld [vmem:[#allocation2 + $0xa0] sm:$0xff] }
  0xf3   :  { %v254_v52 = vadd.f32 %v6775_v16, %v253_v50  ;;  %v5625_v53 = vpop.f32.mrb[10].mxu1  ;;  %1823 = vrot.lane.b32.xlu1 %v249_v35, %s6639_s23  ;;  %5633 = vmatmul.mubr.msk.bf16.vlgmr.msra.gmra.mrb[16].mxu1 %vm25_vm3, %v6810_v47  ;;  %v6917_v35 = vld [vmem:[#allocation2 + $0x40] sm:$0xff] }
  0xf4   :  { %v294_v54 = vmax.f32 %v262_v49, 0.0  ;;  %v265_v55 = vadd.f32 %v5625_v53, %v6775_v16  ;;  %5649 = vmatpush3.bf16.msra.mxu1 %v517_v48  ;;  %v256_v56 = vpop.f32.mrb[11].mxu1 }
  0xf5   :  { %v292_v57 = vmax.f32 %v254_v52, 0.0  ;;  %v257_v58 = vadd.f32 %v6775_v16, %v256_v56  ;;  %1825 = vrot.lane.b32.xlu0 %v254_v52, %s6639_s23  ;;  %6571 = vmatprep.subr.msk.bf16.mxu1 %vm391_vm2, %v6817_v51  ;;  %v6842_v1 = vld [vmem:[#allocation2 + $0x71] sm:$0xff] }
  0xf6   :  { %311 = vst.msk [vmem:[#allocation2 + $0xd1] sm:$0xff] %vm25_vm3, %v294_v54  ;;  %v295_v59 = vmax.f32 %v265_v55, 0.0  ;;  %v6831_v61 = vld [vmem:[#allocation2 + $0x51] sm:$0xff] }
  0xf7   :  { %309 = vst.msk [vmem:[#allocation2 + $0xb1] sm:$0xff] %vm25_vm3, %v292_v57  ;;  %v293_v62 = vmax.f32 %v257_v58, 0.0  ;;  %1827 = vrot.lane.b32.xlu1 %v257_v58, %s6639_s23  ;;  %v6837_v63 = vpack.c.bf16 %v6831_v61, %v6829_v60  ;;  %v6907_v31 = vld [vmem:[#allocation2 + $0x50] sm:$0xff] }
  0xf8   :  { %312 = vst.msk [vmem:[#allocation2 + $0xe1] sm:$0xff] %vm25_vm3, %v295_v59  ;;  %v6840_v0 = vld [vmem:[#allocation2 + $0x61] sm:$0xff]  ;;  %v6921_v36 = vpack.c.bf16 %v6907_v31, %v6917_v35  ;;  %v6935_v42 = vld [vmem:[#allocation2 + $0x70] sm:$0xff] }
  0xf9   :  { %310 = vst.msk [vmem:[#allocation2 + $0xc1] sm:$0xff] %vm25_vm3, %v293_v62  ;;  %v5628_v2 = vpop.f32.mrb[12].mxu1  ;;  %1829 = vrot.lane.b32.xlu0 %v262_v49, %s6639_s23  ;;  %5636 = vmatprep.mubr.msk.bf16.mxu1 %vm25_vm3, %v6837_v63  ;;  %v6850_v3 = vpack.c.bf16 %v6842_v1, %v6840_v0  ;;  %v6931_v38 = vld [vmem:[#allocation2 + $0x60] sm:$0xff]  ;;  %v6962_v56 = vld [vmem:[#allocation2 + $0x12] sm:$0xff] }
  0xfa   :  { %v278_v4 = vadd.f32 %v5628_v2, %v6775_v16  ;;  %v269_v5 = vpop.f32.mrb[13].mxu1  ;;  %v6939_v43 = vpack.c.bf16 %v6935_v42, %v6931_v38  ;;  %v6970_v62 = vld [vmem:[#allocation2 + $0x22] sm:$0xff]  ;;  %v6972_v2 = vld [vmem:[#allocation2 + $0x52] sm:$0xff] }
  0xfb   :  { %v270_v6 = vadd.f32 %v6775_v16, %v269_v5  ;;  %v5629_v7 = vpop.f32.mrb[14].mxu1  ;;  %1831 = vrot.lane.b32.xlu1 %v265_v55, %s6639_s23  ;;  %5637 = vmatmul.mubr.msk.bf16.gmra.mrb[20].mxu1 %vm25_vm3, %v6850_v3  ;;  %v616_v55 = vld [vmem:[#allocation2 + $0x2] sm:$0xff] }
  0xfc   :  { %v298_v8 = vmax.f32 %v278_v4, 0.0  ;;  %v281_v9 = vadd.f32 %v5629_v7, %v6775_v16  ;;  %v272_v10 = vpop.f32.mrb[15].mxu1  ;;  %v632_v59 = vpack.c.bf16 %v6962_v56, %v616_v55  ;;  %v6981_v7 = vld [vmem:[#allocation2 + $0x42] sm:$0xff] }
  0xfd   :  { %v296_v12 = vmax.f32 %v270_v6, 0.0  ;;  %v273_v13 = vadd.f32 %v6775_v16, %v272_v10  ;;  %1833 = vrot.lane.b32.xlu0 %v270_v6, %s6639_s23  ;;  %v6869_v20 = vld [vmem:[#allocation2 + $0xd1] sm:$0xff]  ;;  %v831_v6 = vsel %vm391_vm2, %v805_v37, 0  ;;  %v6995_v10 = vld [vmem:[#allocation2 + $0x62] sm:$0xff] }
  0xfe   :  { %315 = vst.msk [vmem:[#allocation2 + $0x111] sm:$0xff] %vm25_vm3, %v298_v8  ;;  %v299_v14 = vmax.f32 %v281_v9, 0.0  ;;  %v6861_v15 = vld [vmem:[#allocation2 + $0xb1] sm:$0xff]  ;;  %v6985_v8 = vpack.c.bf16 %v6972_v2, %v6981_v7 }
  0xff   :  { %313 = vst.msk [vmem:[#allocation2 + $0xf1] sm:$0xff] %vm25_vm3, %v296_v12  ;;  %v297_v17 = vmax.f32 %v273_v13, 0.0  ;;  %1835 = vrot.lane.b32.xlu1 %v273_v13, %s6639_s23  ;;  %v362_v18 = vpack.c.bf16 %v6861_v15, %v350_v11  ;;  %v6881_v21 = vld [vmem:[#allocation2 + $0xe1] sm:$0xff]  ;;  %v6933_v40 = vld [vmem:[#allocation2 + $0xb0] sm:$0xff] }
 0x100   :  { %316 = vst.msk [vmem:[#allocation2 + $0x121] sm:$0xff] %vm25_vm3, %v299_v14  ;;  %v6867_v19 = vld [vmem:[#allocation2 + $0xc1] sm:$0xff]  ;;  %v337_v46 = vpack.c.bf16 %v6933_v40, %v325_v39  ;;  %v6949_v50 = vld [vmem:[#allocation2 + $0xd0] sm:$0xff] }
 0x101   :  { %314 = vst.msk [vmem:[#allocation2 + $0x101] sm:$0xff] %vm25_vm3, %v297_v17  ;;  %1837 = vrot.lane.b32.xlu0 %v278_v4, %s6639_s23  ;;  %5640 = vmatprep.mubr.msk.bf16.mxu1 %vm25_vm3, %v362_v18  ;;  %v6876_v16 = vpack.c.bf16 %v6869_v20, %v6867_v19  ;;  %v6945_v48 = vld [vmem:[#allocation2 + $0xc0] sm:$0xff]  ;;  %v6974_v4 = vld [vmem:[#allocation2 + $0x32] sm:$0xff] }
 0x102   :  { %v6953_v51 = vpack.c.bf16 %v6949_v50, %v6945_v48  ;;  %v329_v52 = vld [vmem:[#allocation2 + $0xe0] sm:$0xff]  ;;  %v6978_v5 = vpack.c.bf16 %v6974_v4, %v6970_v62  ;;  %v6997_v12 = vld [vmem:[#allocation2 + $0xb2] sm:$0xff] }
 0x103   :  { %1839 = vrot.lane.b32.xlu1 %v281_v9, %s6639_s23  ;;  %5641 = vmatmul.mubr.msk.bf16.gmra.mrb[24].mxu1 %vm25_vm3, %v6876_v16  ;;  %v970_v9 = vld [vmem:[%s8010_s2 + $0x10] sm:$0xf]  ;;  %v624_v11 = vld [vmem:[#allocation2 + $0xa2] sm:$0xff] }
 0x104   :  { %v6999_v13 = vld [vmem:[#allocation2 + $0x72] sm:$0xff]  ;;  %v636_v17 = vpack.c.bf16 %v6997_v12, %v624_v11  ;;  %v7009_v18 = vld [vmem:[#allocation2 + $0xc2] sm:$0xff]  ;;  %v798_v11 = vpack.c.bf16 %v6917_v35, %v6909_v32  ;;  %v801_v32 = vpack.c.bf16 %v6945_v48, %v6933_v40  ;;  %v963_v40 = vpack.c.bf16 %v6829_v60, %v6803_v45 }
 0x105   :  { %v6893_v27 = vld [vmem:[#allocation2 + $0x111] sm:$0xff]  ;;  %v7003_v14 = vpack.c.bf16 %v6999_v13, %v6995_v10  ;;  %v966_v45 = vpack.c.bf16 %v6867_v19, %v6861_v15  ;;  %v967_v60 = vpack.c.bf16 %v6881_v21, %v6869_v20  ;;  %v1127_v15 = vpack.c.bf16 %v6970_v62, %v6962_v56 }
 0x106   :  { %v6883_v22 = vld [vmem:[#allocation2 + $0xf1] sm:$0xff]  ;;  %v1128_v19 = vpack.c.bf16 %v6981_v7, %v6974_v4  ;;  %v1631_v4 = vld [vmem:[%s8010_s2 + $0x20] sm:$0xf] }
 0x107   :  { %v6887_v23 = vpack.c.bf16 %v6883_v22, %v6881_v21  ;;  %v6947_v49 = vld [vmem:[#allocation2 + $0xf0] sm:$0xff]  ;;  %v1129_v21 = vpack.c.bf16 %v6995_v10, %v6972_v2  ;;  %v1657_v10 = vsel %vm391_vm2, %v1631_v4, 0 }
 0x108   :  { %v6891_v26 = vld [vmem:[#allocation2 + $0x101] sm:$0xff]  ;;  %v6956_v53 = vpack.c.bf16 %v6947_v49, %v329_v52  ;;  %v332_v57 = vld [vmem:[#allocation2 + $0x110] sm:$0xff] }
 0x109   :  { %5644 = vmatprep.mubr.msk.bf16.mxu1 %vm25_vm3, %v6887_v23  ;;  %v6899_v28 = vpack.c.bf16 %v6893_v27, %v6891_v26  ;;  %v331_v54 = vld [vmem:[#allocation2 + $0x100] sm:$0xff]  ;;  %v7011_v24 = vld [vmem:[#allocation2 + $0xf2] sm:$0xff] }
 0x10a   :  { %v6964_v58 = vpack.c.bf16 %v332_v57, %v331_v54  ;;  %v7031_v55 = vld [vmem:[#allocation2 + $0x112] sm:$0xff]  ;;  %v803_v35 = vpack.c.bf16 %v331_v54, %v6947_v49  ;;  %v964_v49 = vpack.c.bf16 %v6840_v0, %v6831_v61  ;;  %v968_v61 = vpack.c.bf16 %v6891_v26, %v6883_v22  ;;  %v961_v0 = vld [vmem:[#allocation2 + $0x121] sm:$0xff]  ;;  %v1466_v22 = vld [vmem:[%s8010_s2 + $0x1c] sm:$0xf] }
 0x10b   :  { %5645 = vmatmul.mubr.msk.bf16.gmra.mrb[28].mxu1 %vm25_vm3, %v6899_v28  ;;  %v1118_v26 = vld [vmem:[#allocation2 + $0x82] sm:$0xff]  ;;  %v1492_v2 = vsel %vm391_vm2, %v1466_v22, 0  ;;  %v7134_v7 = vld [vmem:[#allocation2 + $0x90] sm:$0xff] }
 0x10c   :  { %5650 = vmatprep.mubr.msk.bf16.mxu1 %vm25_vm3, %v333_v29  ;;  %v7013_v29 = vld [vmem:[#allocation2 + $0xd2] sm:$0xff] }
 0x113   :  { %5651 = vmatmul.mubr.msk.bf16.vlgmr.msra.gmra.mrb[16].mxu1 %vm25_vm3, %v6913_v33 }
 0x114   :  { %5667 = vmatpush3.bf16.msra.mxu1 %v666_v34  ;;  %5654 = vmatprep.mubr.msk.bf16.mxu1 %vm25_vm3, %v6921_v36  ;;  %v7017_v34 = vpack.c.bf16 %v7013_v29, %v7009_v18 }
 0x115   :  { %6572 = vmatprep.subr.msk.bf16.mxu1 %vm391_vm2, %v805_v37  ;;  %v7019_v37 = vld [vmem:[#allocation2 + $0xe2] sm:$0xff] }
 0x116   :  { %8020 = vst [vmem:[#allocation6_spill] sm:$0xff] %v7017_v34  ;;  %v7023_v39 = vpack.c.bf16 %v7011_v24, %v7019_v37  ;;  %v1132_v54 = vpack.c.bf16 %v7019_v37, %v7013_v29 }
 0x118   :  { %8021 = vst [vmem:[#allocation7_spill] sm:$0xff] %v7023_v39 }
 0x11b   :  { %5655 = vmatmul.mubr.msk.bf16.gmra.mrb[20].mxu1 %vm25_vm3, %v6939_v43 }
 0x11c   :  { %5658 = vmatprep.mubr.msk.bf16.mxu1 %vm25_vm3, %v337_v46  ;;  %v7029_v46 = vld [vmem:[#allocation2 + $0x102] sm:$0xff] }
 0x11d   :  { %v1133_v56 = vpack.c.bf16 %v7029_v46, %v7011_v24  ;;  %v5191_v24 = vld [vmem:[%s8010_s2 + $0x28] sm:$0xf] }
 0x123   :  { %5659 = vmatmul.mubr.msk.bf16.gmra.mrb[24].mxu1 %vm25_vm3, %v6953_v51 }
 0x124   :  { %5662 = vmatprep.mubr.msk.bf16.mxu1 %vm25_vm3, %v6956_v53 }
 0x12b   :  { %5663 = vmatmul.mubr.msk.bf16.gmra.mrb[28].mxu1 %vm25_vm3, %v6964_v58 }
 0x12c   :  { %5668 = vmatprep.mubr.msk.bf16.mxu1 %vm25_vm3, %v632_v59  ;;  %v7035_v59 = vpack.c.bf16 %v7031_v55, %v7029_v46 }
 0x133   :  { %5669 = vmatmul.mubr.msk.bf16.vlgmr.msra.gmra.mrb[16].mxu1 %vm25_vm3, %v6978_v5 }
 0x134   :  { %5685 = vmatpush3.bf16.msra.mxu1 %v831_v6  ;;  %5672 = vmatprep.mubr.msk.bf16.mxu1 %vm25_vm3, %v6985_v8  ;;  %v797_v6 = vpack.c.bf16 %v6905_v30, %v6889_v25  ;;  %v7053_v25 = vld [vmem:[#allocation2 + $0x80] sm:$0xff] }
 0x135   :  { %6573 = vmatprep.subr.msk.bf16.mxu1 %vm391_vm2, %v970_v9  ;;  %v800_v30 = vpack.c.bf16 %v7053_v25, %v6935_v42  ;;  %v962_v42 = vpack.c.bf16 %v6801_v44, %v6795_v41  ;;  %v953_v41 = vld [vmem:[#allocation2 + $0x81] sm:$0xff] }
 0x136   :  { %v965_v44 = vpack.c.bf16 %v953_v41, %v6842_v1  ;;  %v969_v1 = vpack.c.bf16 %v961_v0, %v6893_v27  ;;  %v1130_v27 = vpack.c.bf16 %v1118_v26, %v6999_v13  ;;  %v7199_v13 = vld [vmem:[%s8010_s2 + $0x30] sm:$0xf] }
 0x137   :  { %6582 = vmatprep.subr.msk.bf16.mxu0 %vm391_vm2, %v7199_v13 }
 0x13b   :  { %5673 = vmatmul.mubr.msk.bf16.gmra.mrb[20].mxu1 %vm25_vm3, %v7003_v14 }
 0x13c   :  { %5676 = vmatprep.mubr.msk.bf16.mxu1 %vm25_vm3, %v636_v17  ;;  %v996_v17 = vsel %vm391_vm2, %v970_v9, 0 }
 0x143   :  { %5677 = vmatmul.mubr.msk.bf16.gmra.mrb[24].mxu1 %vm25_vm3, %v7017_v34  ;;  %v1135_v34 = vld [vmem:[%s8010_s2 + $0x14] sm:$0xf] }
 0x144   :  { %5680 = vmatprep.mubr.msk.bf16.mxu1 %vm25_vm3, %v7023_v39  ;;  %v799_v39 = vpack.c.bf16 %v6931_v38, %v6907_v31  ;;  %v802_v31 = vpack.c.bf16 %v329_v52, %v6949_v50  ;;  %v7065_v38 = vld [vmem:[#allocation2 + $0x120] sm:$0xff]  ;;  %v1161_v48 = vsel %vm391_vm2, %v1135_v34, 0  ;;  %v1301_v50 = vld [vmem:[%s8010_s2 + $0x18] sm:$0xf]  ;;  %v1131_v52 = vpack.c.bf16 %v7009_v18, %v6997_v12  ;;  %v7211_v18 = vld [vmem:[%s8010_s2 + $0x34] sm:$0xf] }
 0x145   :  { %v804_v9 = vpack.c.bf16 %v7065_v38, %v332_v57  ;;  %v1327_v20 = vsel %vm391_vm2, %v1301_v50, 0  ;;  %v1126_v57 = vld [vmem:[#allocation2 + $0x122] sm:$0xff] }
 0x146   :  { %v1134_v62 = vpack.c.bf16 %v1126_v57, %v7031_v55 }
 0x14b   :  { %5681 = vmatmul.mubr.msk.bf16.gmra.mrb[28].mxu1 %vm25_vm3, %v7035_v59 }
 0x14c   :  { %5686 = vmatprep.mubr.msk.bf16.mxu1 %vm25_vm3, %v797_v6 }
 0x153   :  { %5687 = vmatmul.mubr.msk.bf16.vlgmr.msra.gmra.mrb[16].mxu1 %vm25_vm3, %v798_v11 }
 0x154   :  { %5703 = vmatpush3.bf16.msra.mxu1 %v996_v17  ;;  %5690 = vmatprep.mubr.msk.bf16.mxu1 %vm25_vm3, %v799_v39 }
 0x155   :  { %6574 = vmatprep.subr.msk.bf16.mxu1 %vm391_vm2, %v1135_v34 }
 0x156   :  { %v1814_v34 = vpop.permute.xlu1 %1813 }
 0x157   :  { %v1810_v29 = vpop.permute.xlu0 %1809 }
 0x15a   :  { %v1816_v39 = vpop.permute.xlu1 %1815 }
 0x15b   :  { %5691 = vmatmul.mubr.msk.bf16.gmra.mrb[20].mxu1 %vm25_vm3, %v800_v30  ;;  %v1812_v37 = vpop.permute.xlu0 %1811 }
 0x15c   :  { %5694 = vmatprep.mubr.msk.bf16.mxu1 %vm25_vm3, %v801_v32 }
 0x15f   :  { %v1818_v46 = vpop.permute.xlu0 %1817 }
 0x161   :  { %v1820_v55 = vpop.permute.xlu1 %1819 }
 0x163   :  { %5695 = vmatmul.mubr.msk.bf16.gmra.mrb[24].mxu1 %vm25_vm3, %v802_v31 }
 0x164   :  { %5698 = vmatprep.mubr.msk.bf16.mxu1 %vm25_vm3, %v803_v35 }
 0x16b   :  { %5699 = vmatmul.mubr.msk.bf16.gmra.mrb[28].mxu1 %vm25_vm3, %v804_v9  ;;  %v1824_v9 = vpop.permute.xlu1 %1823 }
 0x16c   :  { %5704 = vmatprep.mubr.msk.bf16.mxu1 %vm25_vm3, %v962_v42 }
 0x173   :  { %5705 = vmatmul.mubr.msk.bf16.vlgmr.msra.gmra.mrb[16].mxu1 %vm25_vm3, %v963_v40 }
 0x174   :  { %5721 = vmatpush3.bf16.msra.mxu1 %v1161_v48  ;;  %5708 = vmatprep.mubr.msk.bf16.mxu1 %vm25_vm3, %v964_v49 }
 0x175   :  { %6575 = vmatprep.subr.msk.bf16.mxu1 %vm391_vm2, %v1301_v50 }
 0x17b   :  { %5709 = vmatmul.mubr.msk.bf16.gmra.mrb[20].mxu1 %vm25_vm3, %v965_v44 }
 0x17c   :  { %5712 = vmatprep.mubr.msk.bf16.mxu1 %vm25_vm3, %v966_v45 }
 0x183   :  { %5713 = vmatmul.mubr.msk.bf16.gmra.mrb[24].mxu1 %vm25_vm3, %v967_v60 }
 0x184   :  { %5716 = vmatprep.mubr.msk.bf16.mxu1 %vm25_vm3, %v968_v61 }
 0x18b   :  { %5717 = vmatmul.mubr.msk.bf16.gmra.mrb[28].mxu1 %vm25_vm3, %v969_v1 }
 0x18c   :  { %5722 = vmatprep.mubr.msk.bf16.mxu1 %vm25_vm3, %v1127_v15 }
 0x193   :  { %5723 = vmatmul.mubr.msk.bf16.vlgmr.msra.gmra.mrb[16].mxu1 %vm25_vm3, %v1128_v19  ;;  %v1828_v19 = vpop.permute.xlu1 %1827 }
 0x194   :  { %5739 = vmatpush3.bf16.msra.mxu1 %v1327_v20  ;;  %5726 = vmatprep.mubr.msk.bf16.mxu1 %vm25_vm3, %v1129_v21 }
 0x195   :  { %6576 = vmatprep.subr.msk.bf16.mxu1 %vm391_vm2, %v1466_v22 }
 0x19b   :  { %5727 = vmatmul.mubr.msk.bf16.gmra.mrb[20].mxu1 %vm25_vm3, %v1130_v27 }
 0x19c   :  { %5730 = vmatprep.mubr.msk.bf16.mxu1 %vm25_vm3, %v1131_v52 }
 0x1a3   :  { %5731 = vmatmul.mubr.msk.bf16.gmra.mrb[24].mxu1 %vm25_vm3, %v1132_v54  ;;  %v2119_v54 = vsel %vm391_vm2, %v5191_v24, 0 }
 0x1a4   :  { %5734 = vmatprep.mubr.msk.bf16.mxu1 %vm25_vm3, %v1133_v56 }
 0x1ab   :  { %5735 = vmatmul.mubr.msk.bf16.gmra.mrb[28].mxu1 %vm25_vm3, %v1134_v62  ;;  %v7241_v62 = vld [vmem:[%s8010_s2 + $0x24] sm:$0xf] }
 0x1ac   :  { %5740 = vmatprep.mubr.msk.bf16.mxu1 %vm25_vm3, %v6913_v33  ;;  %v1296_v33 = vpack.c.bf16 %v7134_v7, %v7053_v25  ;;  %v1822_v25 = vpop.permute.xlu0 %1821 }
 0x1b0   :  { %v1826_v45 = vpop.permute.xlu0 %1825 }
 0x1b3   :  { %5741 = vmatmul.mubr.msk.bf16.vlgmr.msra.gmra.mrb[16].mxu1 %vm25_vm3, %v6921_v36  ;;  %v7145_v36 = vld [vmem:[#allocation2 + $0x130] sm:$0xff] }
 0x1b4   :  { %5757 = vmatpush3.bf16.msra.mxu1 %v1492_v2  ;;  %5744 = vmatprep.mubr.msk.bf16.mxu1 %vm25_vm3, %v6939_v43  ;;  %v1300_v43 = vpack.c.bf16 %v7145_v36, %v7065_v38 }
 0x1b5   :  { %6577 = vmatprep.subr.msk.bf16.mxu1 %vm391_vm2, %v1631_v4 }
 0x1bb   :  { %5745 = vmatmul.mubr.msk.bf16.gmra.mrb[20].mxu1 %vm25_vm3, %v1296_v33  ;;  %v1830_v33 = vpop.permute.xlu0 %1829 }
 0x1bc   :  { %5748 = vmatprep.mubr.msk.bf16.mxu1 %vm25_vm3, %v6953_v51  ;;  %v7157_v51 = vld [vmem:[#allocation2 + $0x91] sm:$0xff] }
 0x1c3   :  { %5749 = vmatmul.mubr.msk.bf16.gmra.mrb[24].mxu1 %vm25_vm3, %v6956_v53  ;;  %v1461_v53 = vpack.c.bf16 %v7157_v51, %v953_v41 }
 0x1c4   :  { %5752 = vmatprep.mubr.msk.bf16.mxu1 %vm25_vm3, %v6964_v58  ;;  %v7187_v58 = vld [vmem:[#allocation2 + $0x132] sm:$0xff] }
 0x1cb   :  { %5753 = vmatmul.mubr.msk.bf16.gmra.mrb[28].mxu1 %vm25_vm3, %v1300_v43 }
 0x1cc   :  { %5758 = vmatprep.mubr.msk.bf16.mxu1 %vm25_vm3, %v6810_v47  ;;  %v7167_v47 = vld [vmem:[#allocation2 + $0x131] sm:$0xff] }
 0x1d3   :  { %5759 = vmatmul.mubr.msk.bf16.vlgmr.msra.gmra.mrb[16].mxu1 %vm25_vm3, %v6837_v63  ;;  %v1465_v63 = vpack.c.bf16 %v7167_v47, %v961_v0 }
 0x1d4   :  { %5775 = vmatpush3.bf16.msra.mxu1 %v1657_v10  ;;  %5762 = vmatprep.mubr.msk.bf16.mxu1 %vm25_vm3, %v6850_v3  ;;  %v7177_v3 = vld [vmem:[#allocation2 + $0x92] sm:$0xff] }
 0x1db   :  { %5763 = vmatmul.mubr.msk.bf16.gmra.mrb[20].mxu1 %vm25_vm3, %v1461_v53 }
 0x1dc   :  { %5766 = vmatprep.mubr.msk.bf16.mxu1 %vm25_vm3, %v6876_v16  ;;  %v1626_v16 = vpack.c.bf16 %v7177_v3, %v1118_v26 }
 0x1e3   :  { %5767 = vmatmul.mubr.msk.bf16.gmra.mrb[24].mxu1 %vm25_vm3, %v6887_v23  ;;  %v8022_v23 = vld [vmem:[#allocation6_spill] sm:$0xff] }
 0x1e4   :  { %5770 = vmatprep.mubr.msk.bf16.mxu1 %vm25_vm3, %v6899_v28  ;;  %v8023_v28 = vld [vmem:[#allocation7_spill] sm:$0xff] }
 0x1eb   :  { %5771 = vmatmul.mubr.msk.bf16.gmra.mrb[28].mxu1 %vm25_vm3, %v1465_v63  ;;  %v1832_v63 = vpop.permute.xlu1 %1831 }
 0x1ec   :  { %5776 = vmatprep.mubr.msk.bf16.mxu1 %vm25_vm3, %v6978_v5  ;;  %v1630_v5 = vpack.c.bf16 %v7187_v58, %v1126_v57 }
 0x1f3   :  { %5777 = vmatmul.mubr.msk.bf16.vlgmr.msra.gmra.mrb[16].mxu1 %vm25_vm3, %v6985_v8  ;;  %v1897_v8 = vld [vmem:[%s8012_s4] sm:$0xf] }
 0x1f4   :  { %5780 = vmatprep.mubr.msk.bf16.mxu1 %vm25_vm3, %v7003_v14  ;;  %6578 = vmatprep.subr.msk.bf16.mxu1 %vm391_vm2, %v1897_v8  ;;  %v1928_v12 = vsel %vm391_vm2, %v1897_v8, 0  ;;  %v7205_v14 = vsel %vm391_vm2, %v7199_v13, 0 }
 0x1f5   :  { %5793 = vmatpush3.bf16.msra.mxu1 %v1928_v12  ;;  %5865 = vmatpush3.bf16.msra.mxu0 %v7205_v14 }
 0x1f6   :  { %6584 = vmatprep.subr.msk.bf16.mxu0 %vm391_vm2, %v7211_v18  ;;  %6579 = vmatprep.subr.msk.bf16.mxu1 %vm391_vm2, %v5191_v24 }
 0x1fb   :  { %5781 = vmatmul.mubr.msk.bf16.gmra.mrb[20].mxu1 %vm25_vm3, %v1626_v16 }
 0x1fc   :  { %5784 = vmatprep.mubr.msk.bf16.mxu1 %vm25_vm3, %v8022_v23 }
 0x203   :  { %5785 = vmatmul.mubr.msk.bf16.gmra.mrb[24].mxu1 %vm25_vm3, %v8023_v28 }
 0x204   :  { %5788 = vmatprep.mubr.msk.bf16.mxu1 %vm25_vm3, %v7035_v59  ;;  %v7222_v59 = vld [vmem:[%s8013_s5 + $0x1] ss:$0 sm:$0xff] }
 0x20b   :  { %5789 = vmatmul.mubr.msk.bf16.gmra.mrb[28].mxu1 %vm25_vm3, %v1630_v5 }
 0x2c6   :  { %v5778_v6 = vpop.f32.mrb[16].mxu1 }
 0x2c7   :  { %v1779_v11 = vadd.f32 %v5778_v6, %v7222_v59  ;;  %v1693_v17 = vpop.f32.mrb[17].mxu1 }
 0x2c8   :  { %v1777_v30 = vadd.f32 %v7222_v59, %v1693_v17  ;;  %v5779_v32 = vpop.f32.mrb[18].mxu1 }
 0x2c9   :  { %v1859_v31 = vadd.f32 %v1814_v34, %v1779_v11  ;;  %v1780_v35 = vadd.f32 %v5779_v32, %v7222_v59  ;;  %v1696_v38 = vpop.f32.mrb[19].mxu1  ;;  %v1834_v32 = vpop.permute.xlu0 %1833 }
 0x2ca   :  { %v1857_v42 = vadd.f32 %v1810_v29, %v1777_v30  ;;  %v1778_v40 = vadd.f32 %v7222_v59, %v1696_v38  ;;  %v2722_v30 = vsel %vm391_vm2, %v7211_v18, 0  ;;  %v7273_v38 = vld [vmem:[%s8010_s2 + $0x38] sm:$0xf]  ;;  %v1836_v18 = vpop.permute.xlu1 %1835 }
 0x2cb   :  { %v1875_v48 = vmax.f32 %v1859_v31, 0.0  ;;  %v1860_v49 = vadd.f32 %v1816_v39, %v1780_v35 }
 0x2cc   :  { %v1873_v50 = vmax.f32 %v1857_v42, 0.0  ;;  %v1858_v41 = vadd.f32 %v1812_v37, %v1778_v40 }
 0x2cd   :  { %2029 = vst.msk [vmem:[#allocation2 + $0x31] sm:$0xff] %vm25_vm3, %v1875_v48  ;;  %v1876_v44 = vmax.f32 %v1860_v49, 0.0 }
 0x2ce   :  { %2027 = vst.msk [vmem:[#allocation2 + $0x11] sm:$0xff] %vm25_vm3, %v1873_v50  ;;  %v1874_v60 = vmax.f32 %v1858_v41, 0.0  ;;  %v5782_v61 = vpop.f32.mrb[20].mxu1 }
 0x2cf   :  { %v1890_v0 = vpack.c.bf16 %v1876_v44, %v1875_v48  ;;  %2030 = vst.msk [vmem:[#allocation2 + $0x41] sm:$0xff] %vm25_vm3, %v1876_v44  ;;  %v1783_v1 = vadd.f32 %v5782_v61, %v7222_v59  ;;  %v1709_v15 = vpop.f32.mrb[21].mxu1 }
 0x2d0   :  { %v1889_v20 = vpack.c.bf16 %v1874_v60, %v1873_v50  ;;  %2028 = vst.msk [vmem:[#allocation2 + $0x21] sm:$0xff] %vm25_vm3, %v1874_v60  ;;  %v1781_v21 = vadd.f32 %v7222_v59, %v1709_v15  ;;  %v5783_v22 = vpop.f32.mrb[22].mxu1  ;;  %v1838_v15 = vpop.permute.xlu0 %1837 }
 0x2d1   :  { %v1863_v26 = vadd.f32 %v1822_v25, %v1783_v1  ;;  %v1784_v27 = vadd.f32 %v5783_v22, %v7222_v59  ;;  %v1712_v52 = vpop.f32.mrb[23].mxu1 }
 0x2d2   :  { %v1861_v56 = vadd.f32 %v1818_v46, %v1781_v21  ;;  %v1782_v57 = vadd.f32 %v7222_v59, %v1712_v52  ;;  %5794 = vmatprep.mubr.msk.bf16.mxu1 %vm25_vm3, %v1889_v20 }
 0x2d3   :  { %v1879_v2 = vmax.f32 %v1863_v26, 0.0  ;;  %v1864_v4 = vadd.f32 %v1824_v9, %v1784_v27  ;;  %5795 = vmatmul.mubr.msk.bf16.vlgmr.msra.gmra.mrb[32].mxu1 %vm25_vm3, %v1890_v0 }
 0x2d4   :  { %v1877_v43 = vmax.f32 %v1861_v56, 0.0  ;;  %v1862_v10 = vadd.f32 %v1820_v55, %v1782_v57  ;;  %5811 = vmatpush3.bf16.msra.mxu1 %v2119_v54  ;;  %v7260_v55 = vld [vmem:[#allocation2 + $0x30] sm:$0xff]  ;;  %v1840_v57 = vpop.permute.xlu1 %1839 }
 0x2d5   :  { %2033 = vst.msk [vmem:[#allocation2 + $0x71] sm:$0xff] %vm25_vm3, %v1879_v2  ;;  %v1880_v53 = vmax.f32 %v1864_v4, 0.0  ;;  %6580 = vmatprep.subr.msk.bf16.mxu1 %vm391_vm2, %v7241_v62  ;;  %v7252_v24 = vld [vmem:[#allocation2 + $0x10] sm:$0xff] }
 0x2d6   :  { %2031 = vst.msk [vmem:[#allocation2 + $0x51] sm:$0xff] %vm25_vm3, %v1877_v43  ;;  %v1878_v16 = vmax.f32 %v1862_v10, 0.0  ;;  %v5786_v23 = vpop.f32.mrb[24].mxu1  ;;  %v7248_v28 = vld [vmem:[#allocation2 + $0x40] sm:$0xff] }
 0x2d7   :  { %v1892_v5 = vpack.c.bf16 %v1880_v53, %v1879_v2  ;;  %2034 = vst.msk [vmem:[#allocation2 + $0x81] sm:$0xff] %vm25_vm3, %v1880_v53  ;;  %v1787_v8 = vadd.f32 %v5786_v23, %v7222_v59  ;;  %v1725_v12 = vpop.f32.mrb[25].mxu1  ;;  %v7254_v29 = vld [vmem:[#allocation2 + $0x20] sm:$0xff]  ;;  %v2524_v25 = vpack.c.bf16 %v7248_v28, %v7260_v55 }
 0x2d8   :  { %v1891_v34 = vpack.c.bf16 %v1878_v16, %v1877_v43  ;;  %2032 = vst.msk [vmem:[#allocation2 + $0x61] sm:$0xff] %vm25_vm3, %v1878_v16  ;;  %v1785_v37 = vadd.f32 %v7222_v59, %v1725_v12  ;;  %v5787_v39 = vpop.f32.mrb[26].mxu1  ;;  %v2523_v46 = vpack.c.bf16 %v7254_v29, %v7252_v24 }
 0x2d9   :  { %v1867_v6 = vadd.f32 %v1830_v33, %v1787_v8  ;;  %v1788_v11 = vadd.f32 %v5787_v39, %v7222_v59  ;;  %v1728_v17 = vpop.f32.mrb[27].mxu1 }
 0x2da   :  { %v1865_v31 = vadd.f32 %v1826_v45, %v1785_v37  ;;  %v1786_v35 = vadd.f32 %v7222_v59, %v1728_v17  ;;  %5798 = vmatprep.mubr.msk.bf16.mxu1 %vm25_vm3, %v1891_v34  ;;  %5866 = vmatprep.mubr.msk.bf16.mxu0 %vm25_vm3, %v2523_v46  ;;  %v2673_v37 = vld [vmem:[#allocation2 + $0x21] sm:$0xff] }
 0x2db   :  { %v1883_v9 = vmax.f32 %v1867_v6, 0.0  ;;  %v1868_v42 = vadd.f32 %v1832_v63, %v1788_v11  ;;  %5799 = vmatmul.mubr.msk.bf16.gmra.mrb[36].mxu1 %vm25_vm3, %v1892_v5  ;;  %5867 = vmatmul.mubr.msk.bf16.vlgmr.msra.gmra.mrb[0].mxu0 %vm25_vm3, %v2524_v25  ;;  %v2070_v5 = vld [vmem:[#allocation2 + $0x11] sm:$0xff] }
 0x2dc   :  { %v1881_v40 = vmax.f32 %v1865_v31, 0.0  ;;  %v1866_v48 = vadd.f32 %v1828_v19, %v1786_v35  ;;  %5883 = vmatpush3.bf16.msra.mxu0 %v2722_v30  ;;  %v7293_v26 = vld [vmem:[#allocation2 + $0x70] sm:$0xff]  ;;  %v2688_v25 = vpack.c.bf16 %v2673_v37, %v2070_v5  ;;  %v2675_v30 = vld [vmem:[#allocation2 + $0x41] sm:$0xff] }
 0x2dd   :  { %2037 = vst.msk [vmem:[#allocation2 + $0xd1] sm:$0xff] %vm25_vm3, %v1883_v9  ;;  %v1884_v49 = vmax.f32 %v1868_v42, 0.0  ;;  %6585 = vmatprep.subr.msk.bf16.mxu0 %vm391_vm2, %v7273_v38  ;;  %v7285_v0 = vld [vmem:[#allocation2 + $0x50] sm:$0xff] }
 0x2de   :  { %2035 = vst.msk [vmem:[#allocation2 + $0xb1] sm:$0xff] %vm25_vm3, %v1881_v40  ;;  %v1882_v50 = vmax.f32 %v1866_v48, 0.0  ;;  %v5790_v41 = vpop.f32.mrb[28].mxu1  ;;  %v7281_v44 = vld [vmem:[#allocation2 + $0x80] sm:$0xff]  ;;  %v2072_v31 = vld [vmem:[#allocation2 + $0x31] sm:$0xff]  ;;  %v2243_v48 = vsel %vm391_vm2, %v7241_v62, 0 }
 0x2df   :  { %v1894_v45 = vpack.c.bf16 %v1884_v49, %v1883_v9  ;;  %2038 = vst.msk [vmem:[#allocation2 + $0xe1] sm:$0xff] %vm25_vm3, %v1884_v49  ;;  %v1791_v60 = vadd.f32 %v5790_v41, %v7222_v59  ;;  %v1741_v61 = vpop.f32.mrb[29].mxu1  ;;  %v7287_v1 = vld [vmem:[#allocation2 + $0x60] sm:$0xff]  ;;  %v2526_v56 = vpack.c.bf16 %v7281_v44, %v7293_v26  ;;  %v7328_v9 = vpack.c.bf16 %v2072_v31, %v2673_v37  ;;  %v5208_v41 = vld [vmem:[%s8010_s2 + $0x2c] sm:$0xf] }
 0x2e0   :  { %v1893_v19 = vpack.c.bf16 %v1882_v50, %v1881_v40  ;;  %2036 = vst.msk [vmem:[#allocation2 + $0xc1] sm:$0xff] %vm25_vm3, %v1882_v50  ;;  %v1789_v20 = vadd.f32 %v7222_v59, %v1741_v61  ;;  %v5791_v21 = vpop.f32.mrb[30].mxu1  ;;  %v2525_v22 = vpack.c.bf16 %v7287_v1, %v7285_v0  ;;  %v2677_v35 = vld [vmem:[#allocation2 + $0x61] sm:$0xff]  ;;  %v2689_v42 = vpack.c.bf16 %v2675_v30, %v2072_v31  ;;  %v5244_v50 = vld [vmem:[%s8010_s2 + $0x3c] sm:$0xf]  ;;  %v2076_v61 = vld [vmem:[#allocation2 + $0x71] sm:$0xff] }
 0x2e1   :  { %v1871_v27 = vadd.f32 %v1838_v15, %v1791_v60  ;;  %v1792_v52 = vadd.f32 %v5791_v21, %v7222_v59  ;;  %v1744_v54 = vpop.f32.mrb[31].mxu1  ;;  %v7348_v62 = vld [vmem:[#allocation2 + $0x81] sm:$0xff]  ;;  %v7354_v15 = vpack.c.bf16 %v2076_v61, %v2677_v35  ;;  %v2392_v31 = vsel %vm391_vm2, %v5208_v41, 0 }
 0x2e2   :  { %v1869_v2 = vadd.f32 %v1834_v32, %v1789_v20  ;;  %v1790_v4 = vadd.f32 %v7222_v59, %v1744_v54  ;;  %5802 = vmatprep.mubr.msk.bf16.mxu1 %vm25_vm3, %v1893_v19  ;;  %5870 = vmatprep.mubr.msk.bf16.mxu0 %vm25_vm3, %v2525_v22  ;;  %v7307_v59 = vld [vmem:[#allocation2 + $0x1] sm:$0xff]  ;;  %v2074_v32 = vld [vmem:[#allocation2 + $0x51] sm:$0xff]  ;;  %v2691_v19 = vpack.c.bf16 %v7348_v62, %v2076_v61 }
 0x2e3   :  { %v1887_v33 = vmax.f32 %v1871_v27, 0.0  ;;  %v1872_v43 = vadd.f32 %v1840_v57, %v1792_v52  ;;  %5803 = vmatmul.mubr.msk.bf16.gmra.mrb[40].mxu1 %vm25_vm3, %v1894_v45  ;;  %5871 = vmatmul.mubr.msk.bf16.gmra.mrb[4].mxu0 %vm25_vm3, %v2526_v56  ;;  %v2085_v17 = vpack.c.bf16 %v2070_v5, %v7307_v59  ;;  %v7332_v40 = vpack.c.bf16 %v2074_v32, %v2675_v30  ;;  %v7382_v5 = vld [vmem:[#allocation2 + $0x12] sm:$0xff] }
 0x2e4   :  { %v1885_v10 = vmax.f32 %v1869_v2, 0.0  ;;  %v1870_v53 = vadd.f32 %v1836_v18, %v1790_v4  ;;  %v7317_v6 = vld [vmem:[#allocation2 + $0xd0] sm:$0xff]  ;;  %v2887_v18 = vsel %vm391_vm2, %v7273_v38, 0  ;;  %v2690_v49 = vpack.c.bf16 %v2677_v35, %v2074_v32  ;;  %v7352_v38 = vld [vmem:[#allocation2 + $0xa1] sm:$0xff] }
 0x2e5   :  { %2041 = vst.msk [vmem:[#allocation2 + $0x111] sm:$0xff] %vm25_vm3, %v1887_v33  ;;  %v1888_v63 = vmax.f32 %v1872_v43, 0.0  ;;  %v7310_v12 = vld [vmem:[#allocation2 + $0xb0] sm:$0xff]  ;;  %v7375_v43 = vld [vmem:[#allocation2] sm:$0xff]  ;;  %v2061_v30 = vpack.c.bf16 %v7285_v0, %v7248_v28 }
 0x2e6   :  { %2039 = vst.msk [vmem:[#allocation2 + $0xf1] sm:$0xff] %vm25_vm3, %v1885_v10  ;;  %v1886_v16 = vmax.f32 %v1870_v53, 0.0  ;;  %v7305_v23 = vld [vmem:[#allocation2 + $0xe0] sm:$0xff]  ;;  %v2078_v45 = vld [vmem:[#allocation2 + $0xb1] sm:$0xff] }
 0x2e7   :  { %v1896_v8 = vpack.c.bf16 %v1888_v63, %v1887_v33  ;;  %2042 = vst.msk [vmem:[#allocation2 + $0x121] sm:$0xff] %vm25_vm3, %v1888_v63  ;;  %v7312_v34 = vld [vmem:[#allocation2 + $0xc0] sm:$0xff]  ;;  %v2528_v11 = vpack.c.bf16 %v7305_v23, %v7317_v6  ;;  %v2089_v20 = vpack.c.bf16 %v2078_v45, %v7352_v38  ;;  %v2080_v54 = vld [vmem:[#allocation2 + $0xd1] sm:$0xff] }
 0x2e8   :  { %v1895_v39 = vpack.c.bf16 %v1886_v16, %v1885_v10  ;;  %2040 = vst.msk [vmem:[#allocation2 + $0x101] sm:$0xff] %vm25_vm3, %v1886_v16  ;;  %v2527_v46 = vpack.c.bf16 %v7312_v34, %v7310_v12  ;;  %v2681_v60 = vld [vmem:[#allocation2 + $0xc1] sm:$0xff]  ;;  %v2841_v32 = vld [vmem:[#allocation2 + $0x52] sm:$0xff] }
 0x2e9   :  { %v2692_v21 = vpack.c.bf16 %v2681_v60, %v2078_v45  ;;  %v2683_v22 = vld [vmem:[#allocation2 + $0xe1] sm:$0xff]  ;;  %v7363_v56 = vpack.c.bf16 %v2080_v54, %v2681_v60  ;;  %v2843_v0 = vld [vmem:[#allocation2 + $0x72] sm:$0xff] }
 0x2ea   :  { %5806 = vmatprep.mubr.msk.bf16.mxu1 %vm25_vm3, %v1895_v39  ;;  %5874 = vmatprep.mubr.msk.bf16.mxu0 %vm25_vm3, %v2527_v46  ;;  %v2693_v57 = vpack.c.bf16 %v2683_v22, %v2080_v54  ;;  %v7377_v10 = vld [vmem:[#allocation2 + $0x22] sm:$0xff]  ;;  %v2839_v46 = vld [vmem:[#allocation2 + $0x32] sm:$0xff] }
 0x2eb   :  { %5807 = vmatmul.mubr.msk.bf16.gmra.mrb[44].mxu1 %vm25_vm3, %v1896_v8  ;;  %5875 = vmatmul.mubr.msk.bf16.gmra.mrb[8].mxu0 %vm25_vm3, %v2528_v11  ;;  %v2059_v8 = vpack.c.bf16 %v7252_v24, %v7375_v43  ;;  %v2853_v37 = vpack.c.bf16 %v7377_v10, %v7382_v5  ;;  %v2840_v39 = vld [vmem:[#allocation2 + $0x42] sm:$0xff]  ;;  %v2847_v61 = vld [vmem:[#allocation2 + $0xd2] sm:$0xff] }
 0x2ec   :  { %5812 = vmatprep.mubr.msk.bf16.mxu1 %vm25_vm3, %v2085_v17  ;;  %5884 = vmatprep.mubr.msk.bf16.mxu0 %vm25_vm3, %v2688_v25  ;;  %v2084_v53 = vld [vmem:[#allocation2 + $0x111] sm:$0xff]  ;;  %v7393_v11 = vld [vmem:[#allocation2 + $0x62] sm:$0xff]  ;;  %v2060_v17 = vpack.c.bf16 %v7260_v55, %v7254_v29  ;;  %v2854_v24 = vpack.c.bf16 %v2840_v39, %v2839_v46  ;;  %v3052_v25 = vsel %vm391_vm2, %v5244_v50, 0 }
 0x2ed   :  { %v2082_v27 = vld [vmem:[#allocation2 + $0xf1] sm:$0xff]  ;;  %v2855_v35 = vpack.c.bf16 %v7393_v11, %v2841_v32  ;;  %v7409_v28 = vld [vmem:[#allocation2 + $0x82] sm:$0xff] }
 0x2ee   :  { %v7365_v2 = vpack.c.bf16 %v2082_v27, %v2683_v22  ;;  %v7373_v33 = vld [vmem:[#allocation2 + $0x121] sm:$0xff]  ;;  %v2056_v45 = vld [vmem:[#allocation2 + $0xf0] sm:$0xff] }
 0x2ef   :  { %v2685_v52 = vld [vmem:[#allocation2 + $0x101] sm:$0xff]  ;;  %v2695_v16 = vpack.c.bf16 %v7373_v33, %v2084_v53 }
 0x2f0   :  { %v2694_v4 = vpack.c.bf16 %v2685_v52, %v2082_v27  ;;  %v7379_v63 = vpack.c.bf16 %v2084_v53, %v2685_v52  ;;  %v7414_v29 = vld [vmem:[#allocation2 + $0xa0] sm:$0xff]  ;;  %v2058_v52 = vld [vmem:[#allocation2 + $0x110] sm:$0xff]  ;;  %v2360_v53 = vpack.c.bf16 %v2841_v32, %v2840_v39 }
 0x2f1   :  { %v2846_v55 = vld [vmem:[#allocation2 + $0xc2] sm:$0xff] }
 0x2f2   :  { %v2850_v60 = vld [vmem:[#allocation2 + $0x102] sm:$0xff]  ;;  %v2363_v39 = vpack.c.bf16 %v2847_v61, %v2846_v55 }
 0x2f3   :  { %5813 = vmatmul.mubr.msk.bf16.vlgmr.msra.gmra.mrb[48].mxu1 %vm25_vm3, %v7328_v9  ;;  %5885 = vmatmul.mubr.msk.bf16.vlgmr.msra.gmra.mrb[0].mxu0 %vm25_vm3, %v2689_v42  ;;  %v5253_v42 = vld [vmem:[%s8010_s2 + $0x40] sm:$0xf] }
 0x2f4   :  { %5901 = vmatpush3.bf16.msra.mxu0 %v2887_v18  ;;  %5816 = vmatprep.mubr.msk.bf16.mxu1 %vm25_vm3, %v7332_v40  ;;  %v2062_v18 = vpack.c.bf16 %v7293_v26, %v7287_v1  ;;  %v2064_v1 = vpack.c.bf16 %v7317_v6, %v7312_v34  ;;  %v7432_v22 = vld [vmem:[#allocation2 + $0x122] sm:$0xff]  ;;  %v2851_v34 = vld [vmem:[#allocation2 + $0x112] sm:$0xff] }
 0x2f5   :  { %5888 = vmatprep.mubr.msk.bf16.mxu0 %vm25_vm3, %v2690_v49  ;;  %5829 = vmatpush3.bf16.msra.mxu1 %v2243_v48  ;;  %v2856_v48 = vpack.c.bf16 %v7409_v28, %v2843_v0  ;;  %v2845_v49 = vld [vmem:[#allocation2 + $0xb2] sm:$0xff]  ;;  %v7434_v27 = vld [vmem:[#allocation2 + $0x2] sm:$0xff]  ;;  %v2860_v54 = vpack.c.bf16 %v7432_v22, %v2851_v34 }
 0x2f6   :  { %6586 = vmatprep.subr.msk.bf16.mxu0 %vm391_vm2, %v5244_v50  ;;  %6581 = vmatprep.subr.msk.bf16.mxu1 %vm391_vm2, %v5208_v41  ;;  %v2063_v50 = vpack.c.bf16 %v7310_v12, %v7414_v29  ;;  %v2857_v41 = vpack.c.bf16 %v2846_v55, %v2845_v49  ;;  %v2065_v12 = vpack.c.bf16 %v2056_v45, %v7305_v23 }
 0x2f7   :  { %v2358_v23 = vpack.c.bf16 %v7382_v5, %v7434_v27  ;;  %v2361_v5 = vpack.c.bf16 %v2843_v0, %v7393_v11 }
 0x2fb   :  { %5817 = vmatmul.mubr.msk.bf16.gmra.mrb[52].mxu1 %vm25_vm3, %v7354_v15  ;;  %5889 = vmatmul.mubr.msk.bf16.gmra.mrb[4].mxu0 %vm25_vm3, %v2691_v19  ;;  %v2849_v19 = vld [vmem:[#allocation2 + $0xf2] sm:$0xff] }
 0x2fc   :  { %5820 = vmatprep.mubr.msk.bf16.mxu1 %vm25_vm3, %v2089_v20  ;;  %5892 = vmatprep.mubr.msk.bf16.mxu0 %vm25_vm3, %v2692_v21  ;;  %v2859_v20 = vpack.c.bf16 %v2850_v60, %v2849_v19  ;;  %v2057_v21 = vld [vmem:[#allocation2 + $0x100] sm:$0xff] }
 0x2fd   :  { %v2066_v6 = vpack.c.bf16 %v2058_v52, %v2057_v21  ;;  %v2529_v11 = vpack.c.bf16 %v2057_v21, %v2056_v45 }
 0x303   :  { %5821 = vmatmul.mubr.msk.bf16.gmra.mrb[56].mxu1 %vm25_vm3, %v7363_v56  ;;  %5893 = vmatmul.mubr.msk.bf16.gmra.mrb[8].mxu0 %vm25_vm3, %v2693_v57  ;;  %v2359_v57 = vpack.c.bf16 %v2839_v46, %v7377_v10  ;;  %v7454_v10 = vld [vmem:[#allocation2 + $0xa2] sm:$0xff] }
 0x304   :  { %5824 = vmatprep.mubr.msk.bf16.mxu1 %vm25_vm3, %v7365_v2  ;;  %5896 = vmatprep.mubr.msk.bf16.mxu0 %vm25_vm3, %v2694_v4  ;;  %v3217_v4 = vsel %vm391_vm2, %v5253_v42, 0 }
 0x30b   :  { %5825 = vmatmul.mubr.msk.bf16.gmra.mrb[60].mxu1 %vm25_vm3, %v7379_v63  ;;  %5897 = vmatmul.mubr.msk.bf16.gmra.mrb[12].mxu0 %vm25_vm3, %v2695_v16  ;;  %v5262_v16 = vld [vmem:[%s8010_s2 + $0x44] sm:$0xf] }
 0x30c   :  { %5830 = vmatprep.mubr.msk.bf16.mxu1 %vm25_vm3, %v2059_v8  ;;  %5902 = vmatprep.mubr.msk.bf16.mxu0 %vm25_vm3, %v2853_v37  ;;  %v3021_v8 = vpack.c.bf16 %v7134_v7, %v7281_v44  ;;  %v2362_v37 = vpack.c.bf16 %v2845_v49, %v7454_v10  ;;  %v3016_v7 = vld [vmem:[#allocation2 + $0x120] sm:$0xff] }
 0x30d   :  { %v3025_v44 = vpack.c.bf16 %v7145_v36, %v3016_v7  ;;  %v2530_v36 = vpack.c.bf16 %v3016_v7, %v2058_v52 }
 0x313   :  { %5831 = vmatmul.mubr.msk.bf16.vlgmr.msra.gmra.mrb[48].mxu1 %vm25_vm3, %v2060_v17  ;;  %5903 = vmatmul.mubr.msk.bf16.vlgmr.msra.gmra.mrb[0].mxu0 %vm25_vm3, %v2854_v24  ;;  %v3186_v24 = vpack.c.bf16 %v7157_v51, %v7348_v62  ;;  %v3351_v51 = vpack.c.bf16 %v7177_v3, %v7409_v28 }
 0x314   :  { %5919 = vmatpush3.bf16.msra.mxu0 %v3052_v25  ;;  %5834 = vmatprep.mubr.msk.bf16.mxu1 %vm25_vm3, %v2061_v30 }
 0x315   :  { %5906 = vmatprep.mubr.msk.bf16.mxu0 %vm25_vm3, %v2855_v35  ;;  %5847 = vmatpush3.bf16.msra.mxu1 %v2392_v31 }
 0x316   :  { %6587 = vmatprep.subr.msk.bf16.mxu0 %vm391_vm2, %v5253_v42  ;;  %6583 = vmatprep.subr.msk.bf16.mxu1 %vm391_vm2, %v7199_v13  ;;  %v2848_v13 = vld [vmem:[#allocation2 + $0xe2] sm:$0xff] }
 0x317   :  { %v2858_v26 = vpack.c.bf16 %v2848_v13, %v2847_v61  ;;  %v2364_v46 = vpack.c.bf16 %v2849_v19, %v2848_v13 }
 0x31b   :  { %5835 = vmatmul.mubr.msk.bf16.gmra.mrb[52].mxu1 %vm25_vm3, %v2062_v18  ;;  %5907 = vmatmul.mubr.msk.bf16.gmra.mrb[4].mxu0 %vm25_vm3, %v2856_v48 }
 0x31c   :  { %5838 = vmatprep.mubr.msk.bf16.mxu1 %vm25_vm3, %v2063_v50  ;;  %5910 = vmatprep.mubr.msk.bf16.mxu0 %vm25_vm3, %v2857_v41 }
 0x323   :  { %5839 = vmatmul.mubr.msk.bf16.gmra.mrb[56].mxu1 %vm25_vm3, %v2064_v1  ;;  %5911 = vmatmul.mubr.msk.bf16.gmra.mrb[8].mxu0 %vm25_vm3, %v2858_v26 }
 0x324   :  { %5842 = vmatprep.mubr.msk.bf16.mxu1 %vm25_vm3, %v2065_v12  ;;  %5914 = vmatprep.mubr.msk.bf16.mxu0 %vm25_vm3, %v2859_v20 }
 0x32b   :  { %5843 = vmatmul.mubr.msk.bf16.gmra.mrb[60].mxu1 %vm25_vm3, %v2066_v6  ;;  %5915 = vmatmul.mubr.msk.bf16.gmra.mrb[12].mxu0 %vm25_vm3, %v2860_v54 }
 0x32c   :  { %5848 = vmatprep.mubr.msk.bf16.mxu1 %vm25_vm3, %v2358_v23  ;;  %5920 = vmatprep.mubr.msk.bf16.mxu0 %vm25_vm3, %v2060_v17  ;;  %v3382_v17 = vsel %vm391_vm2, %v5262_v16, 0 }
 0x333   :  { %5849 = vmatmul.mubr.msk.bf16.vlgmr.msra.gmra.mrb[48].mxu1 %vm25_vm3, %v2359_v57  ;;  %5921 = vmatmul.mubr.msk.bf16.vlgmr.msra.gmra.mrb[0].mxu0 %vm25_vm3, %v2061_v30 }
 0x334   :  { %5937 = vmatpush3.bf16.msra.mxu0 %v3217_v4  ;;  %5852 = vmatprep.mubr.msk.bf16.mxu1 %vm25_vm3, %v2360_v53 }
 0x335   :  { %5924 = vmatprep.mubr.msk.bf16.mxu0 %vm25_vm3, %v2062_v18  ;;  %6588 = vmatprep.subr.msk.bf16.mxu0 %vm391_vm2, %v5262_v16  ;;  %v7544_v18 = vld [vmem:[%s8011_s3] sm:$0xf] }
 0x336   :  { %6135 = vmatpush3.bf16.msra.mxu1 %v7205_v14  ;;  %v2365_v14 = vpack.c.bf16 %v2851_v34, %v2850_v60 }
 0x33b   :  { %5853 = vmatmul.mubr.msk.bf16.gmra.mrb[52].mxu1 %vm25_vm3, %v2361_v5  ;;  %5925 = vmatmul.mubr.msk.bf16.gmra.mrb[4].mxu0 %vm25_vm3, %v3021_v8 }
 0x33c   :  { %5856 = vmatprep.mubr.msk.bf16.mxu1 %vm25_vm3, %v2362_v37  ;;  %5928 = vmatprep.mubr.msk.bf16.mxu0 %vm25_vm3, %v2064_v1 }
 0x343   :  { %5857 = vmatmul.mubr.msk.bf16.gmra.mrb[56].mxu1 %vm25_vm3, %v2363_v39  ;;  %5929 = vmatmul.mubr.msk.bf16.gmra.mrb[8].mxu0 %vm25_vm3, %v2065_v12 }
 0x344   :  { %5860 = vmatprep.mubr.msk.bf16.mxu1 %vm25_vm3, %v2364_v46  ;;  %5932 = vmatprep.mubr.msk.bf16.mxu0 %vm25_vm3, %v2066_v6  ;;  %v7563_v6 = vld [vmem:[%s8013_s5 + $0x2] ss:$0 sm:$0xff] }
 0x34b   :  { %5861 = vmatmul.mubr.msk.bf16.gmra.mrb[60].mxu1 %vm25_vm3, %v2365_v14  ;;  %5933 = vmatmul.mubr.msk.bf16.gmra.mrb[12].mxu0 %vm25_vm3, %v3025_v44 }
 0x34c   :  { %5878 = vmatprep.mubr.msk.bf16.mxu1 %vm25_vm3, %v2529_v11  ;;  %5938 = vmatprep.mubr.msk.bf16.mxu0 %vm25_vm3, %v7328_v9  ;;  %v3190_v9 = vpack.c.bf16 %v7167_v47, %v7373_v33  ;;  %v3355_v47 = vpack.c.bf16 %v7187_v58, %v7432_v22 }
 0x353   :  { %5939 = vmatmul.mubr.msk.bf16.vlgmr.msra.gmra.mrb[0].mxu0 %vm25_vm3, %v7332_v40 }
 0x354   :  { %5955 = vmatpush3.bf16.msra.mxu0 %v3382_v17  ;;  %5942 = vmatprep.mubr.msk.bf16.mxu0 %vm25_vm3, %v7354_v15 }
 0x357   :  { %5879 = vmatmul.mubr.msk.bf16.vlgmr.msra.gmra.mrb[60].mxu1 %vm25_vm3, %v2530_v36 }
 0x35b   :  { %5943 = vmatmul.mubr.msk.bf16.gmra.mrb[4].mxu0 %vm25_vm3, %v3186_v24 }
 0x35c   :  { %5946 = vmatprep.mubr.msk.bf16.mxu0 %vm25_vm3, %v7363_v56  ;;  %v3599_v56 = vld [vmem:[%s8011_s3 + $0x4] sm:$0xf] }
 0x35d   :  { %6589 = vmatprep.subr.msk.bf16.mxu0 %vm391_vm2, %v3599_v56  ;;  %v3625_v58 = vsel %vm391_vm2, %v3599_v56, 0 }
 0x363   :  { %5947 = vmatmul.mubr.msk.bf16.gmra.mrb[8].mxu0 %vm25_vm3, %v7365_v2 }
 0x364   :  { %5950 = vmatprep.mubr.msk.bf16.mxu0 %vm25_vm3, %v7379_v63 }
 0x36b   :  { %5951 = vmatmul.mubr.msk.bf16.gmra.mrb[12].mxu0 %vm25_vm3, %v3190_v9 }
 0x36c   :  { %5956 = vmatprep.mubr.msk.bf16.mxu0 %vm25_vm3, %v2359_v57 }
 0x373   :  { %5957 = vmatmul.mubr.msk.bf16.vlgmr.msra.gmra.mrb[0].mxu0 %vm25_vm3, %v2360_v53 }
 0x374   :  { %5960 = vmatprep.mubr.msk.bf16.mxu0 %vm25_vm3, %v2361_v5  ;;  %5973 = vmatpush3.bf16.msra.mxu0 %v3625_v58 }
 0x375   :  { %6590 = vmatprep.subr.msk.bf16.mxu0 %vm391_vm2, %v7544_v18 }
 0x37b   :  { %5961 = vmatmul.mubr.msk.bf16.gmra.mrb[4].mxu0 %vm25_vm3, %v3351_v51 }
 0x37c   :  { %5964 = vmatprep.mubr.msk.bf16.mxu0 %vm25_vm3, %v2363_v39 }
 0x383   :  { %5965 = vmatmul.mubr.msk.bf16.gmra.mrb[8].mxu0 %vm25_vm3, %v2364_v46 }
 0x384   :  { %5968 = vmatprep.mubr.msk.bf16.mxu0 %vm25_vm3, %v2365_v14 }
 0x38b   :  { %5969 = vmatmul.mubr.msk.bf16.gmra.mrb[12].mxu0 %vm25_vm3, %v3355_v47 }
 0x3a6   :  { %v7504_v40 = vpop.f32.mrb[32].mxu1 }
 0x3a7   :  { %8024 = vst [vmem:[#allocation6_spill] sm:$0xff] %v7504_v40  ;;  %v7506_v62 = vpop.f32.mrb[33].mxu1 }
 0x3a8   :  { %8025 = vst [vmem:[#allocation7_spill] sm:$0xff] %v7506_v62  ;;  %v7508_v15 = vpop.f32.mrb[34].mxu1 }
 0x3a9   :  { %8026 = vst [vmem:[#allocation8_spill] sm:$0xff] %v7508_v15  ;;  %v7510_v3 = vpop.f32.mrb[35].mxu1 }
 0x3aa   :  { %8027 = vst [vmem:[#allocation9_spill] sm:$0xff] %v7510_v3 }
 0x3ae   :  { %v7515_v2 = vpop.f32.mrb[36].mxu1 }
 0x3af   :  { %8028 = vst [vmem:[#allocation10_spill] sm:$0xff] %v7515_v2  ;;  %v7519_v33 = vpop.f32.mrb[37].mxu1  ;;  %v4202_v2 = vld [vmem:[%s8011_s3 + $0x10] sm:$0xf] }
 0x3b0   :  { %8029 = vst [vmem:[#allocation11_spill] sm:$0xff] %v7519_v33  ;;  %v7521_v63 = vpop.f32.mrb[38].mxu1  ;;  %v4228_v40 = vsel %vm391_vm2, %v4202_v2, 0 }
 0x3b1   :  { %8030 = vst [vmem:[#allocation12_spill] sm:$0xff] %v7521_v63  ;;  %v7523_v25 = vpop.f32.mrb[39].mxu1 }
 0x3b2   :  { %8031 = vst [vmem:[#allocation13_spill] sm:$0xff] %v7523_v25 }
 0x3b6   :  { %v7525_v30 = vpop.f32.mrb[40].mxu1 }
 0x3b7   :  { %8032 = vst [vmem:[#allocation14_spill] sm:$0xff] %v7525_v30  ;;  %v7527_v32 = vpop.f32.mrb[41].mxu1 }
 0x3b8   :  { %8033 = vst [vmem:[#allocation15_spill] sm:$0xff] %v7527_v32  ;;  %v7529_v31 = vpop.f32.mrb[42].mxu1 }
 0x3b9   :  { %8034 = vst [vmem:[#allocation16_spill] sm:$0xff] %v7529_v31  ;;  %v7531_v35 = vpop.f32.mrb[43].mxu1 }
 0x3ba   :  { %8035 = vst [vmem:[#allocation17_spill] sm:$0xff] %v7531_v35 }
 0x3be   :  { %v7533_v42 = vpop.f32.mrb[44].mxu1 }
 0x3bf   :  { %8036 = vst [vmem:[#allocation18_spill] sm:$0xff] %v7533_v42  ;;  %v7535_v28 = vpop.f32.mrb[45].mxu1 }
 0x3c0   :  { %8037 = vst [vmem:[#allocation19_spill] sm:$0xff] %v7535_v28  ;;  %v7537_v55 = vpop.f32.mrb[46].mxu1 }
 0x3c1   :  { %8038 = vst [vmem:[#allocation20_spill] sm:$0xff] %v7537_v55  ;;  %v7539_v0 = vpop.f32.mrb[47].mxu1 }
 0x3c2   :  { %8039 = vst [vmem:[#allocation21_spill] sm:$0xff] %v7539_v0 }
 0x406   :  { %v5850_v48 = vpop.f32.mrb[48].mxu1 }
 0x407   :  { %v2428_v49 = vpop.f32.mrb[49].mxu1 }
 0x408   :  { %v5851_v50 = vpop.f32.mrb[50].mxu1 }
 0x409   :  { %v2431_v41 = vpop.f32.mrb[51].mxu1 }
 0x40e   :  { %v5854_v13 = vpop.f32.mrb[52].mxu1 }
 0x40f   :  { %v2444_v45 = vpop.f32.mrb[53].mxu1 }
 0x410   :  { %v5855_v60 = vpop.f32.mrb[54].mxu1 }
 0x411   :  { %v2447_v61 = vpop.f32.mrb[55].mxu1 }
 0x416   :  { %v5858_v1 = vpop.f32.mrb[56].mxu1 }
 0x417   :  { %v2460_v26 = vpop.f32.mrb[57].mxu1 }
 0x418   :  { %v7548_v19 = vpop.f32.mrb[58].mxu1 }
 0x419   :  { %v7550_v12 = vpop.f32.mrb[59].mxu1 }
 0x42a   :  { %v7552_v20 = vpop.f32.mrb[60].mxu1 }
 0x42b   :  { %v7554_v21 = vpop.f32.mrb[61].mxu1 }
 0x42c   :  { %v7556_v22 = vpop.f32.mrb[62].mxu1 }
 0x42d   :  { %v7558_v52 = vpop.f32.mrb[63].mxu1 }
 0x446   :  { %v5958_v34 = vpop.f32.mrb[0].mxu0 }
 0x447   :  { %v6184_v54 = vadd.f32 %v5958_v34, %v5850_v48  ;;  %v3418_v23 = vpop.f32.mrb[1].mxu0 }
 0x448   :  { %v6185_v57 = vadd.f32 %v3418_v23, %v2428_v49  ;;  %v5959_v4 = vpop.f32.mrb[2].mxu0 }
 0x449   :  { %v3504_v53 = vadd.f32 %v6184_v54, %v7563_v6  ;;  %v6186_v16 = vadd.f32 %v5959_v4, %v5851_v50  ;;  %v3421_v5 = vpop.f32.mrb[3].mxu0 }
 0x44a   :  { %v3502_v8 = vadd.f32 %v6185_v57, %v7563_v6  ;;  %v6187_v37 = vadd.f32 %v3421_v5, %v2431_v41 }
 0x44b   :  { %v3520_v39 = vmax.f32 %v3504_v53, 0.0  ;;  %v3505_v46 = vadd.f32 %v6186_v16, %v7563_v6 }
 0x44c   :  { %v3518_v7 = vmax.f32 %v3502_v8, 0.0  ;;  %v3503_v14 = vadd.f32 %v6187_v37, %v7563_v6 }
 0x44d   :  { %3536 = vst.msk [vmem:[#allocation2 + $0x31] sm:$0xff] %vm25_vm3, %v3520_v39  ;;  %v3521_v44 = vmax.f32 %v3505_v46, 0.0 }
 0x44e   :  { %3534 = vst.msk [vmem:[#allocation2 + $0x11] sm:$0xff] %vm25_vm3, %v3518_v7  ;;  %v3519_v11 = vmax.f32 %v3503_v14, 0.0  ;;  %v5962_v17 = vpop.f32.mrb[4].mxu0 }
 0x44f   :  { %3537 = vst.msk [vmem:[#allocation2 + $0x41] sm:$0xff] %vm25_vm3, %v3521_v44  ;;  %v6188_v36 = vadd.f32 %v5962_v17, %v5854_v13  ;;  %v3434_v24 = vpop.f32.mrb[5].mxu0  ;;  %v3749_v44 = vsel %vm391_vm2, %v7544_v18, 0 }
 0x450   :  { %3535 = vst.msk [vmem:[#allocation2 + $0x21] sm:$0xff] %vm25_vm3, %v3519_v11  ;;  %v6189_v9 = vadd.f32 %v3434_v24, %v2444_v45  ;;  %v5963_v51 = vpop.f32.mrb[6].mxu0  ;;  %v7613_v24 = vld [vmem:[%s8011_s3 + $0x8] sm:$0xf] }
 0x451   :  { %v3508_v47 = vadd.f32 %v6188_v36, %v7563_v6  ;;  %v6190_v56 = vadd.f32 %v5963_v51, %v5855_v60  ;;  %v3437_v58 = vpop.f32.mrb[7].mxu0 }
 0x452   :  { %v3506_v48 = vadd.f32 %v6189_v9, %v7563_v6  ;;  %v6191_v49 = vadd.f32 %v3437_v58, %v2447_v61 }
 0x453   :  { %v3524_v50 = vmax.f32 %v3508_v47, 0.0  ;;  %v3509_v41 = vadd.f32 %v6190_v56, %v7563_v6 }
 0x454   :  { %v3522_v34 = vmax.f32 %v3506_v48, 0.0  ;;  %v3507_v54 = vadd.f32 %v6191_v49, %v7563_v6  ;;  %v7580_v45 = vld [vmem:[#allocation2 + $0x31] sm:$0xff] }
 0x455   :  { %3540 = vst.msk [vmem:[#allocation2 + $0x71] sm:$0xff] %vm25_vm3, %v3524_v50  ;;  %v3525_v13 = vmax.f32 %v3509_v41, 0.0  ;;  %v7578_v23 = vld [vmem:[#allocation2 + $0x11] sm:$0xff] }
 0x456   :  { %3538 = vst.msk [vmem:[#allocation2 + $0x51] sm:$0xff] %vm25_vm3, %v3522_v34  ;;  %v3523_v60 = vmax.f32 %v3507_v54, 0.0  ;;  %v5966_v57 = vpop.f32.mrb[8].mxu0  ;;  %v3591_v61 = vpack.c.bf16 %v7578_v23, %v7307_v59  ;;  %v7585_v4 = vld [vmem:[#allocation2 + $0x41] sm:$0xff]  ;;  %v7587_v53 = vld [vmem:[#allocation2 + $0x32] sm:$0xff] }
 0x457   :  { %v7589_v16 = vld [vmem:[#allocation2 + $0x42] sm:$0xff]  ;;  %3541 = vst.msk [vmem:[#allocation2 + $0x81] sm:$0xff] %vm25_vm3, %v3525_v13  ;;  %v6192_v5 = vadd.f32 %v5966_v57, %v5858_v1  ;;  %v3450_v8 = vpop.f32.mrb[9].mxu0 }
 0x458   :  { %v7592_v37 = vld [vmem:[#allocation2 + $0x21] sm:$0xff]  ;;  %3539 = vst.msk [vmem:[#allocation2 + $0x61] sm:$0xff] %vm25_vm3, %v3523_v60  ;;  %v6193_v7 = vadd.f32 %v3450_v8, %v2460_v26  ;;  %v5967_v14 = vpop.f32.mrb[10].mxu0  ;;  %5974 = vmatprep.mubr.msk.bf16.mxu0 %vm25_vm3, %v3591_v61  ;;  %v7615_v26 = vld [vmem:[#allocation2 + $0x12] sm:$0xff] }
 0x459   :  { %v7594_v39 = vld [vmem:[#allocation2 + $0x22] sm:$0xff]  ;;  %v7604_v1 = vpack.c.bf16 %v7580_v45, %v7592_v37  ;;  %v3512_v11 = vadd.f32 %v6192_v5, %v7563_v6  ;;  %v6194_v17 = vadd.f32 %v5967_v14, %v7548_v19  ;;  %v3453_v36 = vpop.f32.mrb[11].mxu0 }
 0x45a   :  { %v3510_v51 = vadd.f32 %v6193_v7, %v7563_v6  ;;  %v6195_v47 = vadd.f32 %v3453_v36, %v7550_v12  ;;  %v3552_v59 = vld [vmem:[#allocation2 + $0x20] sm:$0xff]  ;;  %v7772_v25 = vpack.c.bf16 %v7587_v53, %v7594_v39 }
 0x45b   :  { %5975 = vmatmul.mubr.msk.bf16.vlgmr.msra.gmra.mrb[16].mxu0 %vm25_vm3, %v7604_v1  ;;  %v3528_v19 = vmax.f32 %v3512_v11, 0.0  ;;  %v3513_v56 = vadd.f32 %v6194_v17, %v7563_v6  ;;  %v3898_v17 = vsel %vm391_vm2, %v7613_v24, 0 }
 0x45c   :  { %5991 = vmatpush3.bf16.msra.mxu0 %v3749_v44  ;;  %v3526_v58 = vmax.f32 %v3510_v51, 0.0  ;;  %v3511_v48 = vadd.f32 %v6195_v47, %v7563_v6  ;;  %v7641_v57 = vld [vmem:[#allocation2 + $0x71] sm:$0xff]  ;;  %v4037_v51 = vld [vmem:[%s8011_s3 + $0xc] sm:$0xf] }
 0x45d   :  { %6591 = vmatprep.subr.msk.bf16.mxu0 %vm391_vm2, %v7613_v24  ;;  %3544 = vst.msk [vmem:[#allocation2 + $0xd1] sm:$0xff] %vm25_vm3, %v3528_v19  ;;  %v3529_v49 = vmax.f32 %v3513_v56, 0.0  ;;  %v7630_v12 = vld [vmem:[#allocation2 + $0x51] sm:$0xff]  ;;  %v4063_v63 = vsel %vm391_vm2, %v4037_v51, 0 }
 0x45e   :  { %3542 = vst.msk [vmem:[#allocation2 + $0xb1] sm:$0xff] %vm25_vm3, %v3526_v58  ;;  %v3527_v50 = vmax.f32 %v3511_v48, 0.0  ;;  %v5970_v41 = vpop.f32.mrb[12].mxu0  ;;  %v7635_v34 = vpack.c.bf16 %v7630_v12, %v7585_v4  ;;  %v7655_v11 = vld [vmem:[#allocation2 + $0x52] sm:$0xff] }
 0x45f   :  { %3545 = vst.msk [vmem:[#allocation2 + $0xe1] sm:$0xff] %vm25_vm3, %v3529_v49  ;;  %v6196_v54 = vadd.f32 %v5970_v41, %v7552_v20  ;;  %v3466_v13 = vpop.f32.mrb[13].mxu0  ;;  %v7639_v60 = vld [vmem:[#allocation2 + $0x61] sm:$0xff]  ;;  %v3555_v18 = vld [vmem:[#allocation2 + $0x50] sm:$0xff]  ;;  %v7777_v33 = vpack.c.bf16 %v7655_v11, %v7589_v16 }
 0x460   :  { %v7643_v61 = vld [vmem:[#allocation2 + $0x62] sm:$0xff]  ;;  %3543 = vst.msk [vmem:[#allocation2 + $0xc1] sm:$0xff] %vm25_vm3, %v3527_v50  ;;  %v6197_v5 = vadd.f32 %v3466_v13, %v7554_v21  ;;  %v5971_v8 = vpop.f32.mrb[14].mxu0  ;;  %5978 = vmatprep.mubr.msk.bf16.mxu0 %vm25_vm3, %v7635_v34  ;;  %v7651_v7 = vpack.c.bf16 %v7641_v57, %v7639_v60  ;;  %v3557_v9 = vld [vmem:[#allocation2 + $0x70] sm:$0xff] }
 0x461   :  { %v3516_v20 = vadd.f32 %v6196_v54, %v7563_v6  ;;  %v6198_v14 = vadd.f32 %v5971_v8, %v7556_v22  ;;  %v3469_v44 = vpop.f32.mrb[15].mxu0  ;;  %v3553_v8 = vld [vmem:[#allocation2 + $0x30] sm:$0xff] }
 0x462   :  { %v3514_v21 = vadd.f32 %v6197_v5, %v7563_v6  ;;  %v6199_v36 = vadd.f32 %v3469_v44, %v7558_v52  ;;  %v7735_v44 = vpack.c.bf16 %v3553_v8, %v3552_v59 }
 0x463   :  { %5979 = vmatmul.mubr.msk.bf16.gmra.mrb[20].mxu0 %vm25_vm3, %v7651_v7  ;;  %v3532_v47 = vmax.f32 %v3516_v20, 0.0  ;;  %v3517_v19 = vadd.f32 %v6198_v14, %v7563_v6 }
 0x464   :  { %v3530_v22 = vmax.f32 %v3514_v21, 0.0  ;;  %v3515_v56 = vadd.f32 %v6199_v36, %v7563_v6  ;;  %v7670_v49 = vld [vmem:[#allocation2 + $0xd1] sm:$0xff] }
 0x465   :  { %3548 = vst.msk [vmem:[#allocation2 + $0x111] sm:$0xff] %vm25_vm3, %v3532_v47  ;;  %v3533_v58 = vmax.f32 %v3517_v19, 0.0  ;;  %v7668_v48 = vld [vmem:[#allocation2 + $0xb1] sm:$0xff] }
 0x466   :  { %3546 = vst.msk [vmem:[#allocation2 + $0xf1] sm:$0xff] %vm25_vm3, %v3530_v22  ;;  %v3531_v52 = vmax.f32 %v3515_v56, 0.0  ;;  %v3595_v50 = vpack.c.bf16 %v7668_v48, %v7352_v38  ;;  %v7675_v41 = vld [vmem:[#allocation2 + $0xe1] sm:$0xff]  ;;  %v7677_v54 = vld [vmem:[#allocation2 + $0xd2] sm:$0xff] }
 0x467   :  { %v7679_v13 = vld [vmem:[#allocation2 + $0xe2] sm:$0xff]  ;;  %3549 = vst.msk [vmem:[#allocation2 + $0x121] sm:$0xff] %vm25_vm3, %v3533_v58  ;;  %v7696_v14 = vld [vmem:[#allocation2 + $0xb2] sm:$0xff] }
 0x468   :  { %v7682_v6 = vld [vmem:[#allocation2 + $0xc1] sm:$0xff]  ;;  %3547 = vst.msk [vmem:[#allocation2 + $0x101] sm:$0xff] %vm25_vm3, %v3531_v52  ;;  %5982 = vmatprep.mubr.msk.bf16.mxu0 %vm25_vm3, %v3595_v50  ;;  %v7710_v19 = vld [vmem:[#allocation2 + $0x10] sm:$0xff] }
 0x469   :  { %v7684_v5 = vld [vmem:[#allocation2 + $0xc2] sm:$0xff]  ;;  %v7694_v38 = vpack.c.bf16 %v7670_v49, %v7682_v6  ;;  %v3566_v20 = vpack.c.bf16 %v7710_v19, %v7375_v43  ;;  %v3559_v21 = vld [vmem:[#allocation2 + $0xb0] sm:$0xff] }
 0x46a   :  { %v3554_v43 = vld [vmem:[#allocation2 + $0x40] sm:$0xff]  ;;  %v3570_v0 = vpack.c.bf16 %v3559_v21, %v7414_v29 }
 0x46b   :  { %5983 = vmatmul.mubr.msk.bf16.gmra.mrb[24].mxu0 %vm25_vm3, %v7694_v38  ;;  %v7739_v46 = vpack.c.bf16 %v3555_v18, %v3554_v43  ;;  %v3560_v55 = vld [vmem:[#allocation2 + $0xc0] sm:$0xff]  ;;  %v4030_v62 = vpack.c.bf16 %v3554_v43, %v3553_v8 }
 0x46c   :  { %v7714_v56 = vld [vmem:[#allocation2 + $0x111] sm:$0xff]  ;;  %v3562_v35 = vld [vmem:[#allocation2 + $0xe0] sm:$0xff] }
 0x46d   :  { %v7704_v36 = vld [vmem:[#allocation2 + $0xf1] sm:$0xff] }
 0x46e   :  { %v7708_v47 = vpack.c.bf16 %v7704_v36, %v7675_v41  ;;  %v7724_v50 = vld [vmem:[#allocation2 + $0xf2] sm:$0xff]  ;;  %v4028_v8 = vld [vmem:[#allocation2 + $0x120] sm:$0xff] }
 0x46f   :  { %v7712_v22 = vld [vmem:[#allocation2 + $0x101] sm:$0xff]  ;;  %v3563_v28 = vld [vmem:[#allocation2 + $0xf0] sm:$0xff]  ;;  %v7801_v3 = vpack.c.bf16 %v7724_v50, %v7679_v13 }
 0x470   :  { %v7716_v58 = vld [vmem:[#allocation2 + $0x102] sm:$0xff]  ;;  %5986 = vmatprep.mubr.msk.bf16.mxu0 %vm25_vm3, %v7708_v47  ;;  %v7722_v52 = vpack.c.bf16 %v7714_v56, %v7712_v22  ;;  %v7757_v31 = vpack.c.bf16 %v3563_v28, %v3562_v35  ;;  %v3565_v32 = vld [vmem:[#allocation2 + $0x110] sm:$0xff] }
 0x471   :  { %v3564_v29 = vld [vmem:[#allocation2 + $0x100] sm:$0xff] }
 0x472   :  { %v7763_v30 = vpack.c.bf16 %v3565_v32, %v3564_v29 }
 0x473   :  { %5987 = vmatmul.mubr.msk.bf16.gmra.mrb[28].mxu0 %vm25_vm3, %v7722_v52 }
 0x474   :  { %5992 = vmatprep.mubr.msk.bf16.mxu0 %vm25_vm3, %v3566_v20  ;;  %v3556_v20 = vld [vmem:[#allocation2 + $0x60] sm:$0xff] }
 0x475   :  { %v7749_v24 = vpack.c.bf16 %v3557_v9, %v3556_v20 }
 0x47b   :  { %5993 = vmatmul.mubr.msk.bf16.vlgmr.msra.gmra.mrb[16].mxu0 %vm25_vm3, %v7735_v44 }
 0x47c   :  { %6009 = vmatpush3.bf16.msra.mxu0 %v3898_v17  ;;  %5996 = vmatprep.mubr.msk.bf16.mxu0 %vm25_vm3, %v7739_v46  ;;  %v3561_v17 = vld [vmem:[#allocation2 + $0xd0] sm:$0xff] }
 0x47d   :  { %6592 = vmatprep.subr.msk.bf16.mxu0 %vm391_vm2, %v4037_v51  ;;  %v7755_v42 = vpack.c.bf16 %v3561_v17, %v3560_v55 }
 0x483   :  { %5997 = vmatmul.mubr.msk.bf16.gmra.mrb[20].mxu0 %vm25_vm3, %v7749_v24 }
 0x484   :  { %6000 = vmatprep.mubr.msk.bf16.mxu0 %vm25_vm3, %v3570_v0  ;;  %v3864_v0 = vpack.c.bf16 %v7615_v26, %v7434_v27  ;;  %v3855_v27 = vld [vmem:[#allocation2 + $0x72] sm:$0xff] }
 0x485   :  { %v7788_v51 = vpack.c.bf16 %v3855_v27, %v7643_v61 }
 0x487   :  { %8040 = vst [vmem:[#allocation22_spill] sm:$0xff] %v7788_v51 }
 0x48b   :  { %6001 = vmatmul.mubr.msk.bf16.gmra.mrb[24].mxu0 %vm25_vm3, %v7755_v42 }
 0x48c   :  { %6004 = vmatprep.mubr.msk.bf16.mxu0 %vm25_vm3, %v7757_v31 }
 0x493   :  { %6005 = vmatmul.mubr.msk.bf16.gmra.mrb[28].mxu0 %vm25_vm3, %v7763_v30 }
 0x494   :  { %6010 = vmatprep.mubr.msk.bf16.mxu0 %vm25_vm3, %v3864_v0  ;;  %v3868_v0 = vpack.c.bf16 %v7696_v14, %v7454_v10  ;;  %v3863_v10 = vld [vmem:[#allocation2 + $0x112] sm:$0xff] }
 0x495   :  { %v7808_v15 = vpack.c.bf16 %v3863_v10, %v7716_v58 }
 0x497   :  { %8042 = vst [vmem:[#allocation24_spill] sm:$0xff] %v7808_v15 }
 0x49b   :  { %6011 = vmatmul.mubr.msk.bf16.vlgmr.msra.gmra.mrb[16].mxu0 %vm25_vm3, %v7772_v25 }
 0x49c   :  { %6027 = vmatpush3.bf16.msra.mxu0 %v4063_v63  ;;  %6014 = vmatprep.mubr.msk.bf16.mxu0 %vm25_vm3, %v7777_v33  ;;  %v7797_v63 = vpack.c.bf16 %v7677_v54, %v7684_v5 }
 0x49d   :  { %6593 = vmatprep.subr.msk.bf16.mxu0 %vm391_vm2, %v4202_v2  ;;  %v4034_v2 = vpack.c.bf16 %v3562_v35, %v3561_v17  ;;  %v8044_v35 = vpack.c.bf16 %v7585_v4, %v7580_v45  ;;  %v8047_v45 = vpack.c.bf16 %v7675_v41, %v7670_v49  ;;  %v8048_v4 = vpack.c.bf16 %v7712_v22, %v7704_v36 }
 0x49e   :  { %8041 = vst [vmem:[#allocation23_spill] sm:$0xff] %v7797_v63  ;;  %v8050_v49 = vpack.c.bf16 %v7589_v16, %v7587_v53  ;;  %v8051_v41 = vpack.c.bf16 %v7643_v61, %v7655_v11  ;;  %v8053_v53 = vpack.c.bf16 %v7679_v13, %v7677_v54  ;;  %v8054_v16 = vpack.c.bf16 %v7716_v58, %v7724_v50  ;;  %v4358_v61 = vld [vmem:[#allocation2 + $0x122] sm:$0xff]  ;;  %v4515_v13 = vld [vmem:[#allocation2 + $0x90] sm:$0xff] }
 0x49f   :  { %v4366_v11 = vpack.c.bf16 %v4358_v61, %v3863_v10  ;;  %v4862_v54 = vld [vmem:[%s8011_s3 + $0x20] sm:$0xf] }
 0x4a3   :  { %6015 = vmatmul.mubr.msk.bf16.gmra.mrb[20].mxu0 %vm25_vm3, %v7788_v51  ;;  %v4031_v51 = vpack.c.bf16 %v3556_v20, %v3555_v18  ;;  %v4035_v18 = vpack.c.bf16 %v3564_v29, %v3563_v28  ;;  %v4185_v28 = vld [vmem:[#allocation2 + $0x81] sm:$0xff]  ;;  %v8060_v20 = vld [vmem:[#allocation8_spill] sm:$0xff] }
 0x4a4   :  { %6018 = vmatprep.mubr.msk.bf16.mxu0 %vm25_vm3, %v3868_v0  ;;  %v4029_v0 = vpack.c.bf16 %v3552_v59, %v7710_v19  ;;  %v4020_v59 = vld [vmem:[#allocation2 + $0x80] sm:$0xff] }
 0x4a5   :  { %v4032_v19 = vpack.c.bf16 %v4020_v59, %v3557_v9  ;;  %v4193_v9 = vld [vmem:[#allocation2 + $0x121] sm:$0xff] }
 0x4a6   :  { %v8056_v36 = vld [vmem:[#allocation23_spill] sm:$0xff] }
 0x4ab   :  { %6019 = vmatmul.mubr.msk.bf16.gmra.mrb[24].mxu0 %vm25_vm3, %v7797_v63  ;;  %v4367_v63 = vld [vmem:[%s8011_s3 + $0x14] sm:$0xf] }
 0x4ac   :  { %6022 = vmatprep.mubr.msk.bf16.mxu0 %vm25_vm3, %v7801_v3 }
 0x4b3   :  { %6023 = vmatmul.mubr.msk.bf16.gmra.mrb[28].mxu0 %vm25_vm3, %v7808_v15  ;;  %v4033_v15 = vpack.c.bf16 %v3560_v55, %v3559_v21  ;;  %v4393_v55 = vsel %vm391_vm2, %v4367_v63, 0  ;;  %v4888_v21 = vsel %vm391_vm2, %v4862_v54, 0 }
 0x4b4   :  { %6028 = vmatprep.mubr.msk.bf16.mxu0 %vm25_vm3, %v4029_v0 }
 0x4bb   :  { %6029 = vmatmul.mubr.msk.bf16.vlgmr.msra.gmra.mrb[16].mxu0 %vm25_vm3, %v4030_v62  ;;  %v4036_v62 = vpack.c.bf16 %v4028_v8, %v3565_v32  ;;  %v8045_v32 = vpack.c.bf16 %v7639_v60, %v7630_v12  ;;  %v4201_v12 = vpack.c.bf16 %v4193_v9, %v7714_v56  ;;  %v8049_v60 = vpack.c.bf16 %v7594_v39, %v7615_v26  ;;  %v4350_v39 = vld [vmem:[#allocation2 + $0x82] sm:$0xff] }
 0x4bc   :  { %6045 = vmatpush3.bf16.msra.mxu0 %v4228_v40  ;;  %6032 = vmatprep.mubr.msk.bf16.mxu0 %vm25_vm3, %v4031_v51  ;;  %v8043_v40 = vpack.c.bf16 %v7592_v37, %v7578_v23  ;;  %v4197_v23 = vpack.c.bf16 %v4185_v28, %v7641_v57  ;;  %v8046_v37 = vpack.c.bf16 %v7682_v6, %v7668_v48  ;;  %v4697_v48 = vld [vmem:[%s8011_s3 + $0x1c] sm:$0xf]  ;;  %v8058_v56 = vld [vmem:[#allocation6_spill] sm:$0xff] }
 0x4bd   :  { %6594 = vmatprep.subr.msk.bf16.mxu0 %vm391_vm2, %v4367_v63  ;;  %v4362_v26 = vpack.c.bf16 %v4350_v39, %v3855_v27  ;;  %v8052_v6 = vpack.c.bf16 %v7684_v5, %v7696_v14  ;;  %v4723_v5 = vsel %vm391_vm2, %v4697_v48, 0  ;;  %v4527_v14 = vpack.c.bf16 %v4515_v13, %v4020_v59  ;;  %v8061_v27 = vld [vmem:[#allocation9_spill] sm:$0xff]  ;;  %v8066_v13 = vld [vmem:[#allocation14_spill] sm:$0xff] }
 0x4c3   :  { %6033 = vmatmul.mubr.msk.bf16.gmra.mrb[20].mxu0 %vm25_vm3, %v4032_v19 }
 0x4c4   :  { %6036 = vmatprep.mubr.msk.bf16.mxu0 %vm25_vm3, %v4033_v15  ;;  %v4532_v15 = vld [vmem:[%s8011_s3 + $0x18] sm:$0xf] }
 0x4c5   :  { %v4558_v57 = vsel %vm391_vm2, %v4532_v15, 0 }
 0x4cb   :  { %6037 = vmatmul.mubr.msk.bf16.gmra.mrb[24].mxu0 %vm25_vm3, %v4034_v2 }
 0x4cc   :  { %6040 = vmatprep.mubr.msk.bf16.mxu0 %vm25_vm3, %v4035_v18 }
 0x4d3   :  { %6041 = vmatmul.mubr.msk.bf16.gmra.mrb[28].mxu0 %vm25_vm3, %v4036_v62 }
 0x4d4   :  { %6046 = vmatprep.mubr.msk.bf16.mxu0 %vm25_vm3, %v8043_v40 }
 0x4db   :  { %6047 = vmatmul.mubr.msk.bf16.vlgmr.msra.gmra.mrb[16].mxu0 %vm25_vm3, %v8044_v35 }
 0x4dc   :  { %6063 = vmatpush3.bf16.msra.mxu0 %v4393_v55  ;;  %6050 = vmatprep.mubr.msk.bf16.mxu0 %vm25_vm3, %v8045_v32 }
 0x4dd   :  { %6595 = vmatprep.subr.msk.bf16.mxu0 %vm391_vm2, %v4532_v15  ;;  %v8062_v15 = vld [vmem:[#allocation10_spill] sm:$0xff] }
 0x4e3   :  { %6051 = vmatmul.mubr.msk.bf16.gmra.mrb[20].mxu0 %vm25_vm3, %v4197_v23 }
 0x4e4   :  { %6054 = vmatprep.mubr.msk.bf16.mxu0 %vm25_vm3, %v8046_v37 }
 0x4eb   :  { %6055 = vmatmul.mubr.msk.bf16.gmra.mrb[24].mxu0 %vm25_vm3, %v8047_v45 }
 0x4ec   :  { %6058 = vmatprep.mubr.msk.bf16.mxu0 %vm25_vm3, %v8048_v4  ;;  %v8064_v4 = vld [vmem:[#allocation12_spill] sm:$0xff] }
 0x4f3   :  { %6059 = vmatmul.mubr.msk.bf16.gmra.mrb[28].mxu0 %vm25_vm3, %v4201_v12 }
 0x4f4   :  { %6064 = vmatprep.mubr.msk.bf16.mxu0 %vm25_vm3, %v8049_v60 }
 0x4fb   :  { %6065 = vmatmul.mubr.msk.bf16.vlgmr.msra.gmra.mrb[16].mxu0 %vm25_vm3, %v8050_v49 }
 0x4fc   :  { %6081 = vmatpush3.bf16.msra.mxu0 %v4558_v57  ;;  %6068 = vmatprep.mubr.msk.bf16.mxu0 %vm25_vm3, %v8051_v41  ;;  %v8065_v57 = vld [vmem:[#allocation13_spill] sm:$0xff] }
 0x4fd   :  { %6596 = vmatprep.subr.msk.bf16.mxu0 %vm391_vm2, %v4697_v48 }
 0x503   :  { %6069 = vmatmul.mubr.msk.bf16.gmra.mrb[20].mxu0 %vm25_vm3, %v4362_v26 }
 0x504   :  { %6072 = vmatprep.mubr.msk.bf16.mxu0 %vm25_vm3, %v8052_v6 }
 0x50b   :  { %6073 = vmatmul.mubr.msk.bf16.gmra.mrb[24].mxu0 %vm25_vm3, %v8053_v53 }
 0x50c   :  { %6076 = vmatprep.mubr.msk.bf16.mxu0 %vm25_vm3, %v8054_v16 }
 0x513   :  { %6077 = vmatmul.mubr.msk.bf16.gmra.mrb[28].mxu0 %vm25_vm3, %v4366_v11 }
 0x514   :  { %6082 = vmatprep.mubr.msk.bf16.mxu0 %vm25_vm3, %v7735_v44 }
 0x51b   :  { %6083 = vmatmul.mubr.msk.bf16.vlgmr.msra.gmra.mrb[16].mxu0 %vm25_vm3, %v7739_v46  ;;  %v4523_v46 = vld [vmem:[#allocation2 + $0x130] sm:$0xff] }
 0x51c   :  { %6099 = vmatpush3.bf16.msra.mxu0 %v4723_v5  ;;  %6086 = vmatprep.mubr.msk.bf16.mxu0 %vm25_vm3, %v7749_v24  ;;  %v4531_v44 = vpack.c.bf16 %v4523_v46, %v4028_v8 }
 0x51d   :  { %6597 = vmatprep.subr.msk.bf16.mxu0 %vm391_vm2, %v4862_v54 }
 0x523   :  { %6087 = vmatmul.mubr.msk.bf16.gmra.mrb[20].mxu0 %vm25_vm3, %v4527_v14 }
 0x524   :  { %6090 = vmatprep.mubr.msk.bf16.mxu0 %vm25_vm3, %v7755_v42 }
 0x52b   :  { %6091 = vmatmul.mubr.msk.bf16.gmra.mrb[24].mxu0 %vm25_vm3, %v7757_v31  ;;  %v4680_v31 = vld [vmem:[#allocation2 + $0x91] sm:$0xff] }
 0x52c   :  { %6094 = vmatprep.mubr.msk.bf16.mxu0 %vm25_vm3, %v7763_v30  ;;  %v4692_v42 = vpack.c.bf16 %v4680_v31, %v4185_v28  ;;  %v4688_v30 = vld [vmem:[#allocation2 + $0x131] sm:$0xff]  ;;  %v8063_v28 = vld [vmem:[#allocation11_spill] sm:$0xff] }
 0x533   :  { %6095 = vmatmul.mubr.msk.bf16.gmra.mrb[28].mxu0 %vm25_vm3, %v4531_v44  ;;  %v8067_v44 = vld [vmem:[#allocation15_spill] sm:$0xff] }
 0x534   :  { %6100 = vmatprep.mubr.msk.bf16.mxu0 %vm25_vm3, %v7604_v1  ;;  %v4696_v1 = vpack.c.bf16 %v4688_v30, %v4193_v9  ;;  %v8068_v30 = vld [vmem:[#allocation16_spill] sm:$0xff] }
 0x53b   :  { %6101 = vmatmul.mubr.msk.bf16.vlgmr.msra.gmra.mrb[16].mxu0 %vm25_vm3, %v7635_v34  ;;  %v8055_v34 = vld [vmem:[#allocation22_spill] sm:$0xff] }
 0x53c   :  { %6117 = vmatpush3.bf16.msra.mxu0 %v4888_v21  ;;  %6104 = vmatprep.mubr.msk.bf16.mxu0 %vm25_vm3, %v7651_v7  ;;  %v4845_v7 = vld [vmem:[#allocation2 + $0x92] sm:$0xff] }
 0x543   :  { %6105 = vmatmul.mubr.msk.bf16.gmra.mrb[20].mxu0 %vm25_vm3, %v4692_v42 }
 0x544   :  { %6108 = vmatprep.mubr.msk.bf16.mxu0 %vm25_vm3, %v7694_v38  ;;  %v4857_v38 = vpack.c.bf16 %v4845_v7, %v4350_v39 }
 0x54b   :  { %6109 = vmatmul.mubr.msk.bf16.gmra.mrb[24].mxu0 %vm25_vm3, %v7708_v47  ;;  %v8057_v47 = vld [vmem:[#allocation24_spill] sm:$0xff] }
 0x54c   :  { %6112 = vmatprep.mubr.msk.bf16.mxu0 %vm25_vm3, %v7722_v52  ;;  %v8059_v52 = vld [vmem:[#allocation7_spill] sm:$0xff] }
 0x553   :  { %6113 = vmatmul.mubr.msk.bf16.gmra.mrb[28].mxu0 %vm25_vm3, %v4696_v1 }
 0x554   :  { %6118 = vmatprep.mubr.msk.bf16.mxu0 %vm25_vm3, %v7772_v25  ;;  %v4853_v25 = vld [vmem:[#allocation2 + $0x132] sm:$0xff] }
 0x555   :  { %v4861_v22 = vpack.c.bf16 %v4853_v25, %v4358_v61 }
 0x55b   :  { %6119 = vmatmul.mubr.msk.bf16.vlgmr.msra.gmra.mrb[16].mxu0 %vm25_vm3, %v7777_v33  ;;  %v7941_v33 = vld [vmem:[%s8013_s5 + $0x4] ss:$0 sm:$0xff] }
 0x55c   :  { %6122 = vmatprep.mubr.msk.bf16.mxu0 %vm25_vm3, %v8055_v34  ;;  %v1973_v58 = vadd.f32 %v8058_v56, %v7941_v33  ;;  %v1965_v50 = vadd.f32 %v7941_v33, %v8059_v52  ;;  %v1976_v24 = vadd.f32 %v8060_v20, %v7941_v33  ;;  %v1968_v51 = vadd.f32 %v7941_v33, %v8061_v27 }
 0x55d   :  { %v1989_v35 = vadd.f32 %v8062_v15, %v7941_v33  ;;  %v1981_v23 = vadd.f32 %v7941_v33, %v8063_v28  ;;  %v1992_v9 = vadd.f32 %v8064_v4, %v7941_v33  ;;  %v1984_v48 = vadd.f32 %v7941_v33, %v8065_v57 }
 0x55e   :  { %v2005_v14 = vadd.f32 %v8066_v13, %v7941_v33  ;;  %v1997_v21 = vadd.f32 %v7941_v33, %v8067_v44  ;;  %v2008_v1 = vadd.f32 %v8068_v30, %v7941_v33 }
 0x563   :  { %6123 = vmatmul.mubr.msk.bf16.gmra.mrb[20].mxu0 %vm25_vm3, %v4857_v38  ;;  %v8069_v38 = vld [vmem:[#allocation17_spill] sm:$0xff] }
 0x564   :  { %6126 = vmatprep.mubr.msk.bf16.mxu0 %vm25_vm3, %v8056_v36  ;;  %v2000_v36 = vadd.f32 %v7941_v33, %v8069_v38 }
 0x56b   :  { %6127 = vmatmul.mubr.msk.bf16.gmra.mrb[24].mxu0 %vm25_vm3, %v7801_v3  ;;  %v7950_v3 = vld [vmem:[%s8013_s5 + $0x3] ss:$0 sm:$0xff]  ;;  %s6640_s5 = smov [#allocation3]  }
 0x56c   :  { %6130 = vmatprep.mubr.msk.bf16.mxu0 %vm25_vm3, %v8057_v47  ;;  %s5077_s28 = sshll.u32 %s6640_s5, 4  ;;  %s5078_s28 = int_to_ptr.vmem [resolvable:$true] %s5077_s28 }
 0x56d   :  { %s6614_s29 = scalar_lea.vmem %s5078_s28, 2048  ;;  %p6619_p1 = scmp.lt.s32.totalorder %s5078_s28, %s5078_s28 }
 0x56e   :  { %p6615_p0 = scmp.ne.s32.totalorder %s5078_s28, %s6614_s29  ;;  %p6620_p2 = scmp.lt.s32.totalorder %s6614_s29, %s6614_s29 }
 0x570   :  { %p6621_p3 = por %p6620_p2, %p6619_p1 }
 0x572   :  { %p6622_p4 = pnand %p6621_p3, %p6615_p0 }
 0x573   :  { %6131 = vmatmul.mubr.msk.bf16.gmra.mrb[28].mxu0 %vm25_vm3, %v4861_v22 }
 0x62e   :  { %v6120_v43 = vpop.f32.mrb[16].mxu0 }
 0x62f   :  { %v6137_v17 = vadd.f32 %v6120_v43, %v1973_v58  ;;  %v4924_v29 = vpop.f32.mrb[17].mxu0 }
 0x630   :  { %v6140_v63 = vadd.f32 %v4924_v29, %v1965_v50  ;;  %v6121_v10 = vpop.f32.mrb[18].mxu0  ;;  %v8070_v29 = vld [vmem:[#allocation18_spill] sm:$0xff] }
 0x631   :  { %v6138_v0 = vadd.f32 %v6137_v17, %v7950_v3  ;;  %v6143_v59 = vadd.f32 %v6121_v10, %v1976_v24  ;;  %v4927_v19 = vpop.f32.mrb[19].mxu0  ;;  %v2021_v27 = vadd.f32 %v8070_v29, %v7941_v33 }
 0x632   :  { %v6141_v2 = vadd.f32 %v6140_v63, %v7950_v3  ;;  %v6146_v18 = vadd.f32 %v4927_v19, %v1968_v51  ;;  %v8071_v63 = vld [vmem:[#allocation19_spill] sm:$0xff]  ;;  %v8072_v19 = vld [vmem:[#allocation20_spill] sm:$0xff] }
 0x633   :  { %v5042_v8 = vmax.f32 %v6138_v0, 0.0  ;;  %v6144_v62 = vadd.f32 %v6143_v59, %v7950_v3  ;;  %v2013_v10 = vadd.f32 %v7941_v33, %v8071_v63 }
 0x634   :  { %v5040_v40 = vmax.f32 %v6141_v2, 0.0  ;;  %v6147_v55 = vadd.f32 %v6146_v18, %v7950_v3  ;;  %v2024_v2 = vadd.f32 %v8072_v19, %v7941_v33 }
 0x635   :  { %5058 = vst [vmem:[#allocation3 + $0x10] sm:$0xff] %v5042_v8  ;;  %v5043_v32 = vmax.f32 %v6144_v62, 0.0  ;;  %v8073_v62 = vld [vmem:[#allocation21_spill] sm:$0xff] }
 0x636   :  { %5056 = vst [vmem:[#allocation3] sm:$0xff] %v5040_v40  ;;  %v5041_v37 = vmax.f32 %v6147_v55, 0.0  ;;  %v6124_v45 = vpop.f32.mrb[20].mxu0  ;;  %v2016_v40 = vadd.f32 %v7941_v33, %v8073_v62 }
 0x637   :  { %5059 = vst [vmem:[#allocation3 + $0x18] sm:$0xff] %v5043_v32  ;;  %v6149_v12 = vadd.f32 %v6124_v45, %v1989_v35  ;;  %v4940_v60 = vpop.f32.mrb[21].mxu0 }
 0x638   :  { %5057 = vst [vmem:[#allocation3 + $0x8] sm:$0xff] %v5041_v37  ;;  %v6152_v49 = vadd.f32 %v4940_v60, %v1981_v23  ;;  %v6125_v41 = vpop.f32.mrb[22].mxu0 }
 0x639   :  { %v6150_v39 = vadd.f32 %v6149_v12, %v7950_v3  ;;  %v6155_v26 = vadd.f32 %v6125_v41, %v1992_v9  ;;  %v4943_v6 = vpop.f32.mrb[23].mxu0 }
 0x63a   :  { %v6153_v53 = vadd.f32 %v6152_v49, %v7950_v3  ;;  %v6158_v16 = vadd.f32 %v4943_v6, %v1984_v48 }
 0x63b   :  { %v5046_v61 = vmax.f32 %v6150_v39, 0.0  ;;  %v6156_v11 = vadd.f32 %v6155_v26, %v7950_v3 }
 0x63c   :  { %v5044_v5 = vmax.f32 %v6153_v53, 0.0  ;;  %v6159_v54 = vadd.f32 %v6158_v16, %v7950_v3 }
 0x63d   :  { %5062 = vst [vmem:[#allocation3 + $0x30] sm:$0xff] %v5046_v61  ;;  %v5047_v46 = vmax.f32 %v6156_v11, 0.0 }
 0x63e   :  { %5060 = vst [vmem:[#allocation3 + $0x20] sm:$0xff] %v5044_v5  ;;  %v5045_v31 = vmax.f32 %v6159_v54, 0.0  ;;  %v6128_v42 = vpop.f32.mrb[24].mxu0 }
 0x63f   :  { %5063 = vst [vmem:[#allocation3 + $0x38] sm:$0xff] %v5047_v46  ;;  %v6161_v34 = vadd.f32 %v6128_v42, %v2005_v14  ;;  %v4956_v7 = vpop.f32.mrb[25].mxu0 }
 0x640   :  { %5061 = vst [vmem:[#allocation3 + $0x28] sm:$0xff] %v5045_v31  ;;  %v6164_v47 = vadd.f32 %v4956_v7, %v1997_v21  ;;  %v6129_v25 = vpop.f32.mrb[26].mxu0 }
 0x641   :  { %v6162_v22 = vadd.f32 %v6161_v34, %v7950_v3  ;;  %v6167_v56 = vadd.f32 %v6129_v25, %v2008_v1  ;;  %v4959_v58 = vpop.f32.mrb[27].mxu0 }
 0x642   :  { %v6165_v52 = vadd.f32 %v6164_v47, %v7950_v3  ;;  %v6170_v50 = vadd.f32 %v4959_v58, %v2000_v36 }
 0x643   :  { %v5050_v43 = vmax.f32 %v6162_v22, 0.0  ;;  %v6168_v20 = vadd.f32 %v6167_v56, %v7950_v3 }
 0x644   :  { %v5048_v24 = vmax.f32 %v6165_v52, 0.0  ;;  %v6171_v17 = vadd.f32 %v6170_v50, %v7950_v3 }
 0x645   :  { %5066 = vst [vmem:[#allocation3 + $0x50] sm:$0xff] %v5050_v43  ;;  %v5051_v51 = vmax.f32 %v6168_v20, 0.0 }
 0x646   :  { %5064 = vst [vmem:[#allocation3 + $0x40] sm:$0xff] %v5048_v24  ;;  %v5049_v0 = vmax.f32 %v6171_v17, 0.0  ;;  %v6132_v59 = vpop.f32.mrb[28].mxu0 }
 0x647   :  { %5067 = vst [vmem:[#allocation3 + $0x58] sm:$0xff] %v5051_v51  ;;  %v6173_v18 = vadd.f32 %v6132_v59, %v2021_v27  ;;  %v4972_v8 = vpop.f32.mrb[29].mxu0 }
 0x648   :  { %5065 = vst [vmem:[#allocation3 + $0x48] sm:$0xff] %v5049_v0  ;;  %v6176_v55 = vadd.f32 %v4972_v8, %v2013_v10  ;;  %v6133_v15 = vpop.f32.mrb[30].mxu0 }
 0x649   :  { %v6174_v35 = vadd.f32 %v6173_v18, %v7950_v3  ;;  %v6179_v32 = vadd.f32 %v6133_v15, %v2024_v2  ;;  %v4975_v28 = vpop.f32.mrb[31].mxu0 }
 0x64a   :  { %v6177_v23 = vadd.f32 %v6176_v55, %v7950_v3  ;;  %v6182_v37 = vadd.f32 %v4975_v28, %v2016_v40 }
 0x64b   :  { %v5054_v45 = vmax.f32 %v6174_v35, 0.0  ;;  %v6180_v4 = vadd.f32 %v6179_v32, %v7950_v3 }
 0x64c   :  { %v5052_v9 = vmax.f32 %v6177_v23, 0.0  ;;  %v6183_v12 = vadd.f32 %v6182_v37, %v7950_v3 }
 0x64d   :  { %5070 = vst [vmem:[#allocation3 + $0x70] sm:$0xff] %v5054_v45  ;;  %v5055_v33 = vmax.f32 %v6180_v4, 0.0 }
 0x64e   :  { %5068 = vst [vmem:[#allocation3 + $0x60] sm:$0xff] %v5052_v9  ;;  %v5053_v60 = vmax.f32 %v6183_v12, 0.0 }
 0x64f   :  { %5071 = vst [vmem:[#allocation3 + $0x78] sm:$0xff] %v5055_v33 }
 0x650   :  { %5069 = vst [vmem:[#allocation3 + $0x68] sm:$0xff] %v5053_v60 }
 0x651   :  { %6625 = shalt.err (!%p6622_p4)
}
 0x652   :  { %s6626_s8 = scalar_lea.hbm %s8014_s6, 2048 }
 0x653   :  { %p6627_p5 = scmp.ne.s32.totalorder %s8014_s6, %s6626_s8  ;;  %p6630_p6 = scmp.lt.u32.totalorder %s6626_s8, %s8014_s6 }
 0x655   :  { %p6632_p7 = pnand %p6630_p6, %p6627_p5 }
 0x657   :  { %6635 = shalt.err (!%p6632_p7)
}
 0x658   :  { %s6641_s11 = smov 128   ;;  %s6642_s12 = smov 8  }
 0x659   :  { %5083 = dma.vmem_to_hbm [thread:$0]  %s5078_s28, 2048, %s8014_s6, [#allocation4], %s6641_s11, %s6641_s11, %s6642_s12  }
 0x65a   :  { %6636 = dma.done.wait [#allocation4], 2048  }
 0x65b   :  { %6637 = vsyncadd [#allocation4], 4294965248 }
 0x65c   :  { %5087 = vsyncpa [#allocation4], 1 }

</bundles_post_ra>
